<compile_context>
chip_gen: v5e
topology: v5e:2x2
jax: 0.10.0
libtpu: 0.0.40
codegen_flags: <defaults>
</compile_context>

<pallas_src>
import functools
import math

import jax
import jax.numpy as jnp
from jax import lax
from jax.experimental import pallas as pl
from jax.experimental.pallas import tpu as pltpu


# ----------------------------------------------------------------------------
# Fused kernel: graph selection (all t-1 steps) + cov(sc[-1]) + GRU + argmax
# ----------------------------------------------------------------------------
def _context_matching_kernel(sc_ref, gflat_ref, tile_ref, group_ref, grows_ref,
                             wih_ref, whh_ref, bih_ref, bhh_ref, idx_ref, *,
                             t, n, bd, period):
    f32 = jnp.float32
    H = period

    gflat = gflat_ref[...]          # (P*n, n)   all graphs, row-stacked
    tile_m = tile_ref[...]          # (P*n, n)   0/1: stacks P copies of y
    group_m = group_ref[...]        # (P, P*n)   0/1: per-graph row-error sum
    wih = wih_ref[...]              # (n*n, 3H)
    whh = whh_ref[...]              # (H,   3H)
    bih = bih_ref[...]              # (1,   3H)
    bhh = bhh_ref[...]              # (1,   3H)
    p_iota = lax.broadcasted_iota(jnp.int32, (period, 1), 0)

    def gru_step(gi, h):
        gh = jnp.dot(h, whh, preferred_element_type=f32) + bhh
        r = jax.nn.sigmoid(gi[:, 0:H] + gh[:, 0:H])
        z = jax.nn.sigmoid(gi[:, H:2 * H] + gh[:, H:2 * H])
        cand = jnp.tanh(gi[:, 2 * H:3 * H] + r * gh[:, 2 * H:3 * H])
        return (1.0 - z) * cand + z * h

    h = jnp.zeros((1, H), f32)

    # Static, fully-unrolled loop over the (small, trace-time constant) time axis.
    for step in range(t - 1):
        x = sc_ref[step].astype(f32)          # (n, bd)
        y = sc_ref[step + 1].astype(f32)      # (n, bd)

        # All `period` candidate graphs in ONE MXU matmul.
        pred = jnp.dot(gflat, x, preferred_element_type=f32)     # (P*n, bd)
        y_rep = jnp.dot(tile_m, y, preferred_element_type=f32)   # (P*n, bd) exact copies of y
        mask = (y_rep != 0.0).astype(f32)
        # masked MAE up to a p-independent positive scale -> same argmin
        e_rows = jnp.sum(jnp.abs(pred - y_rep) * mask,
                         axis=1, keepdims=True)                  # (P*n, 1)
        err_p = jnp.dot(group_m, e_rows, preferred_element_type=f32)  # (P, 1)

        # argmin with first-occurrence tie-breaking (matches jnp/torch argmin).
        mval = jnp.min(err_p)
        best = jnp.min(jnp.where(err_p == mval, p_iota, period)).astype(jnp.int32)
        idx_ref[step] = best

        # GRU step on the flattened selected graph (stays in VMEM, no HBM trip).
        x_row = grows_ref[pl.ds(best, 1), :]                     # (1, n*n)
        gi = jnp.dot(x_row, wih, preferred_element_type=f32) + bih
        h = gru_step(gi, h)

    # Last GRU input: torch.cov(sc[-1]) (rows = variables, unbiased estimator).
    xl = sc_ref[t - 1].astype(f32)                               # (n, bd)
    xc = xl - jnp.mean(xl, axis=1, keepdims=True)
    cov = jnp.dot(xc, xc.T, preferred_element_type=f32) / (bd - 1.0)   # (n, n)

    # vec(cov) @ W_ih^T without any in-kernel reshape: sum of n tiny matmuls.
    gi = bih
    for i in range(n):
        gi = gi + jnp.dot(cov[i:i + 1, :], wih_ref[i * n:(i + 1) * n, :],
                          preferred_element_type=f32)
    h = gru_step(gi, h)

    # softmax(dim=0).argmax() == argmax of the raw last hidden state.
    h_iota = lax.broadcasted_iota(jnp.int32, (1, H), 1)
    hmax = jnp.max(h)
    last_idx = jnp.min(jnp.where(h == hmax, h_iota, H)).astype(jnp.int32)
    idx_ref[t - 1] = last_idx


# ----------------------------------------------------------------------------
# ContextMatching.forward (pretrain=False), Pallas-backed
# ----------------------------------------------------------------------------
def context_matching_forward(inputs, graphs, gru_params):
    b, n, t, d = inputs.shape
    period = graphs.shape[0]
    bd = b * d

    # Same layout massage as the torch code, done in the wrapper (free plumbing).
    sc = jnp.transpose(inputs, (2, 1, 0, 3)).reshape(t, n, bd).astype(jnp.float32)

    w_ih, w_hh, b_ih, b_hh = gru_params
    hidden = w_hh.shape[1]          # == period by construction of the module
    wih_t = jnp.asarray(w_ih, jnp.float32).T                  # (n*n, 3H)
    whh_t = jnp.asarray(w_hh, jnp.float32).T                  # (H, 3H)
    bih = jnp.asarray(b_ih, jnp.float32).reshape(1, 3 * hidden)
    bhh = jnp.asarray(b_hh, jnp.float32).reshape(1, 3 * hidden)

    graphs_f32 = jnp.asarray(graphs, jnp.float32)
    gflat = graphs_f32.reshape(period * n, n)                 # batched-matmul operand
    grows = graphs_f32.reshape(period, n * n)                 # GRU-input rows
    # tile_mat @ y == `period` stacked exact copies of y (0/1 entries).
    tile_mat = jnp.tile(jnp.eye(n, dtype=jnp.float32), (period, 1))        # (P*n, n)
    # group_mat @ row_errors == per-graph error sums (segment sum as a matmul).
    group_mat = jnp.repeat(jnp.eye(period, dtype=jnp.float32), n, axis=1)  # (P, P*n)

    kernel = functools.partial(_context_matching_kernel,
                               t=t, n=n, bd=bd, period=period)
    idx = pl.pallas_call(
        kernel,
        out_shape=jax.ShapeDtypeStruct((t,), jnp.int32),
        in_specs=[pl.BlockSpec(memory_space=pltpu.MemorySpace.VMEM)] * 9,
        out_specs=pl.BlockSpec(memory_space=pltpu.MemorySpace.SMEM),
    )(sc, gflat, tile_mat, group_mat, grows, wih_t, whh_t, bih, bhh)

    # Tiny gather outside the kernel: indices -> (t, n, n) selected graphs.
    return jnp.take(graphs, idx, axis=0)


# ----------------------------------------------------------------------------
# Pure-JAX reference (mirrors the torch forward) for a correctness check
# ----------------------------------------------------------------------------
def reference_forward(inputs, graphs, gru_params):
    b, n, t, d = inputs.shape
    sc = jnp.transpose(inputs, (2, 1, 0, 3)).reshape(t, n, b * d)
    period = graphs.shape[0]
    sel = []
    for idx in range(t - 1):
        x, y = sc[idx], sc[idx + 1]
        mask = (y != 0).astype(jnp.float32)
        errs = jnp.stack(
            [jnp.sum(jnp.abs(graphs[p] @ x - y) * mask) for p in range(period)])
        sel.append(graphs[jnp.argmin(errs)])
    selected = jnp.stack(sel)
    xl = sc[-1]
    xc = xl - xl.mean(axis=1, keepdims=True)
    cov = xc @ xc.T / (xl.shape[1] - 1)
    gru_in = jnp.concatenate(
        [selected.reshape(t - 1, n * n), cov.reshape(1, n * n)], axis=0)
    w_ih, w_hh, b_ih, b_hh = gru_params
    H = w_hh.shape[1]
    h = jnp.zeros((H,), jnp.float32)
    for step in range(t):
        x = gru_in[step]
        gi = w_ih @ x + b_ih
        gh = w_hh @ h + b_hh
        r = jax.nn.sigmoid(gi[:H] + gh[:H])
        z = jax.nn.sigmoid(gi[H:2 * H] + gh[H:2 * H])
        nn_ = jnp.tanh(gi[2 * H:] + r * gh[2 * H:])
        h = (1.0 - z) * nn_ + z * h
    last_idx = jnp.argmax(h)
    return jnp.concatenate([selected, graphs[last_idx][None]], axis=0)


def init_gru_params(key, input_size, hidden_size):
    # nn.GRU default init: U(-1/sqrt(H), 1/sqrt(H)) for all weights & biases
    k = 1.0 / math.sqrt(hidden_size)
    k0, k1, k2, k3 = jax.random.split(key, 4)
    w_ih = jax.random.uniform(k0, (3 * hidden_size, input_size), jnp.float32, -k, k)
    w_hh = jax.random.uniform(k1, (3 * hidden_size, hidden_size), jnp.float32, -k, k)
    b_ih = jax.random.uniform(k2, (3 * hidden_size,), jnp.float32, -k, k)
    b_hh = jax.random.uniform(k3, (3 * hidden_size,), jnp.float32, -k, k)
    return w_ih, w_hh, b_ih, b_hh


if __name__ == "__main__":
    # args.num_nodes = n = 4, args.period = 5, lookback unused (pretrain path)
    b, n, t, d = 2, 4, 6, 3
    period = 5

    key = jax.random.PRNGKey(0)
    k_in, k_g, k_gru = jax.random.split(key, 3)
    inputs = jax.random.normal(k_in, (b, n, t, d), jnp.float32)
    graphs = jax.random.normal(k_g, (period, n, n), jnp.float32)
    gru_params = init_gru_params(k_gru, n * n, period)

    out = context_matching_forward(inputs, graphs, gru_params)
    out = jax.block_until_ready(out)
    assert out.shape == (t, n, n), out.shape

    ref = jax.block_until_ready(reference_forward(inputs, graphs, gru_params))
    assert jnp.allclose(out, ref, atol=1e-5, rtol=1e-5), "mismatch vs reference"

    print("KERNEL_OK")
</pallas_src>

<mosaic_0001>
module attributes {stable_mosaic.version = 11 : i64} {
  func.func @_context_matching_kernel(%arg0: memref<6x4x6xf32, #tpu.memory_space<vmem>>, %arg1: memref<20x4xf32, #tpu.memory_space<vmem>>, %arg2: memref<20x4xf32, #tpu.memory_space<vmem>>, %arg3: memref<5x20xf32, #tpu.memory_space<vmem>>, %arg4: memref<5x16xf32, #tpu.memory_space<vmem>>, %arg5: memref<16x15xf32, #tpu.memory_space<vmem>>, %arg6: memref<5x15xf32, #tpu.memory_space<vmem>>, %arg7: memref<1x15xf32, #tpu.memory_space<vmem>>, %arg8: memref<1x15xf32, #tpu.memory_space<vmem>>, %arg9: memref<6xi32, #tpu.memory_space<smem>>) attributes {dimension_semantics = [], scalar_prefetch = 0 : i64, scratch_operands = 0 : i64, tpu.core_type = #tpu.core_type<tc>} {
    %c0 = arith.constant 0 : index
    %c0_0 = arith.constant 0 : index
    %0 = vector.load %arg1[%c0, %c0_0] : memref<20x4xf32, #tpu.memory_space<vmem>>, vector<20x4xf32>
    %c0_1 = arith.constant 0 : index
    %c0_2 = arith.constant 0 : index
    %1 = vector.load %arg2[%c0_1, %c0_2] : memref<20x4xf32, #tpu.memory_space<vmem>>, vector<20x4xf32>
    %c0_3 = arith.constant 0 : index
    %c0_4 = arith.constant 0 : index
    %2 = vector.load %arg3[%c0_3, %c0_4] : memref<5x20xf32, #tpu.memory_space<vmem>>, vector<5x20xf32>
    %c0_5 = arith.constant 0 : index
    %c0_6 = arith.constant 0 : index
    %3 = vector.load %arg5[%c0_5, %c0_6] : memref<16x15xf32, #tpu.memory_space<vmem>>, vector<16x15xf32>
    %c0_7 = arith.constant 0 : index
    %c0_8 = arith.constant 0 : index
    %4 = vector.load %arg6[%c0_7, %c0_8] : memref<5x15xf32, #tpu.memory_space<vmem>>, vector<5x15xf32>
    %c0_9 = arith.constant 0 : index
    %c0_10 = arith.constant 0 : index
    %5 = vector.load %arg7[%c0_9, %c0_10] : memref<1x15xf32, #tpu.memory_space<vmem>>, vector<1x15xf32>
    %c0_11 = arith.constant 0 : index
    %c0_12 = arith.constant 0 : index
    %6 = vector.load %arg8[%c0_11, %c0_12] : memref<1x15xf32, #tpu.memory_space<vmem>>, vector<1x15xf32>
    %7 = tpu.iota {dimensions = array<i32: 0>} : vector<5x1xi32>
    %cst = arith.constant 0.000000e+00 : f32
    %8 = vector.broadcast %cst : f32 to vector<1x5xf32>
    %c0_13 = arith.constant 0 : index
    %c0_14 = arith.constant 0 : index
    %c0_15 = arith.constant 0 : index
    %9 = vector.load %arg0[%c0_13, %c0_14, %c0_15] : memref<6x4x6xf32, #tpu.memory_space<vmem>>, vector<1x4x6xf32>
    %10 = vector.shape_cast %9 : vector<1x4x6xf32> to vector<4x6xf32>
    %c1 = arith.constant 1 : index
    %c0_16 = arith.constant 0 : index
    %c0_17 = arith.constant 0 : index
    %11 = vector.load %arg0[%c1, %c0_16, %c0_17] : memref<6x4x6xf32, #tpu.memory_space<vmem>>, vector<1x4x6xf32>
    %12 = vector.shape_cast %11 : vector<1x4x6xf32> to vector<4x6xf32>
    %cst_18 = arith.constant dense<0.000000e+00> : vector<20x6xf32>
    %13 = tpu.matmul %0, %10, %cst_18 {dimension_numbers = #tpu.dot_dimension_numbers<[1], [0], [0], [1], [0, 0, 1, 1], [], []>} : vector<20x4xf32>, vector<4x6xf32>, vector<20x6xf32> -> vector<20x6xf32>
    %cst_19 = arith.constant dense<0.000000e+00> : vector<20x6xf32>
    %14 = tpu.matmul %1, %12, %cst_19 {dimension_numbers = #tpu.dot_dimension_numbers<[1], [0], [0], [1], [0, 0, 1, 1], [], []>} : vector<20x4xf32>, vector<4x6xf32>, vector<20x6xf32> -> vector<20x6xf32>
    %cst_20 = arith.constant 0.000000e+00 : f32
    %15 = vector.broadcast %cst_20 : f32 to vector<20x6xf32>
    %16 = arith.cmpf one, %14, %15 : vector<20x6xf32>
    %17 = arith.extui %16 : vector<20x6xi1> to vector<20x6xi32>
    %18 = arith.sitofp %17 : vector<20x6xi32> to vector<20x6xf32>
    %19 = arith.subf %13, %14 : vector<20x6xf32>
    %20 = math.absf %19 : vector<20x6xf32>
    %21 = arith.mulf %20, %18 : vector<20x6xf32>
    %cst_21 = arith.constant dense<0.000000e+00> : vector<20xf32>
    %22 = vector.multi_reduction <add>, %21, %cst_21 [1] : vector<20x6xf32> to vector<20xf32>
    %23 = vector.shape_cast %22 : vector<20xf32> to vector<20x1xf32>
    %cst_22 = arith.constant dense<0.000000e+00> : vector<5x1xf32>
    %24 = tpu.matmul %2, %23, %cst_22 {dimension_numbers = #tpu.dot_dimension_numbers<[1], [0], [0], [1], [0, 0, 1, 1], [], []>} : vector<5x20xf32>, vector<20x1xf32>, vector<5x1xf32> -> vector<5x1xf32>
    %25 = vector.shape_cast %24 : vector<5x1xf32> to vector<1x5x1xf32>
    %cst_23 = arith.constant dense<0x7F800000> : vector<1xf32>
    %26 = vector.multi_reduction <minimumf>, %25, %cst_23 [1, 2] : vector<1x5x1xf32> to vector<1xf32>
    %27 = vector.shape_cast %26 : vector<1xf32> to vector<1x1x1xf32>
    %28 = vector.extract %27[0, 0, 0] : f32 from vector<1x1x1xf32>
    %29 = vector.broadcast %28 : f32 to vector<5x1xf32>
    %30 = arith.cmpf oeq, %24, %29 : vector<5x1xf32>
    %c5_i32 = arith.constant 5 : i32
    %31 = vector.broadcast %c5_i32 : i32 to vector<5x1xi32>
    %32 = arith.select %30, %7, %31 : vector<5x1xi1>, vector<5x1xi32>
    %33 = vector.shape_cast %32 : vector<5x1xi32> to vector<1x5x1xi32>
    %cst_24 = arith.constant dense<2147483647> : vector<1xi32>
    %34 = vector.multi_reduction <minsi>, %33, %cst_24 [1, 2] : vector<1x5x1xi32> to vector<1xi32>
    %35 = vector.shape_cast %34 : vector<1xi32> to vector<1x1x1xi32>
    %36 = vector.extract %35[0, 0, 0] : i32 from vector<1x1x1xi32>
    %c0_25 = arith.constant 0 : index
    %37 = memref.load %arg9[%c0_25] : memref<6xi32, #tpu.memory_space<smem>>
    memref.store %36, %arg9[%c0_25] : memref<6xi32, #tpu.memory_space<smem>>
    %38 = arith.index_cast %36 : i32 to index
    %c0_26 = arith.constant 0 : index
    %39 = vector.load %arg4[%38, %c0_26] : memref<5x16xf32, #tpu.memory_space<vmem>>, vector<1x16xf32>
    %cst_27 = arith.constant dense<0.000000e+00> : vector<1x15xf32>
    %40 = tpu.matmul %39, %3, %cst_27 {dimension_numbers = #tpu.dot_dimension_numbers<[1], [0], [0], [1], [0, 0, 1, 1], [], []>} : vector<1x16xf32>, vector<16x15xf32>, vector<1x15xf32> -> vector<1x15xf32>
    %41 = arith.addf %40, %5 : vector<1x15xf32>
    %cst_28 = arith.constant dense<0.000000e+00> : vector<1x15xf32>
    %42 = tpu.matmul %8, %4, %cst_28 {dimension_numbers = #tpu.dot_dimension_numbers<[1], [0], [0], [1], [0, 0, 1, 1], [], []>} : vector<1x5xf32>, vector<5x15xf32>, vector<1x15xf32> -> vector<1x15xf32>
    %43 = arith.addf %42, %6 : vector<1x15xf32>
    %44 = vector.extract_strided_slice %41 {offsets = [0, 0], sizes = [1, 5], strides = [1, 1]} : vector<1x15xf32> to vector<1x5xf32>
    %45 = vector.extract_strided_slice %43 {offsets = [0, 0], sizes = [1, 5], strides = [1, 1]} : vector<1x15xf32> to vector<1x5xf32>
    %46 = arith.addf %44, %45 : vector<1x5xf32>
    %47 = arith.negf %46 : vector<1x5xf32>
    %48 = math.exp %47 : vector<1x5xf32>
    %cst_29 = arith.constant 1.000000e+00 : f32
    %49 = vector.broadcast %cst_29 : f32 to vector<1x5xf32>
    %50 = arith.addf %49, %48 : vector<1x5xf32>
    %51 = arith.divf %49, %50 : vector<1x5xf32>
    %52 = vector.extract_strided_slice %41 {offsets = [0, 5], sizes = [1, 5], strides = [1, 1]} : vector<1x15xf32> to vector<1x5xf32>
    %53 = vector.extract_strided_slice %43 {offsets = [0, 5], sizes = [1, 5], strides = [1, 1]} : vector<1x15xf32> to vector<1x5xf32>
    %54 = arith.addf %52, %53 : vector<1x5xf32>
    %55 = arith.negf %54 : vector<1x5xf32>
    %56 = math.exp %55 : vector<1x5xf32>
    %cst_30 = arith.constant 1.000000e+00 : f32
    %57 = vector.broadcast %cst_30 : f32 to vector<1x5xf32>
    %58 = arith.addf %57, %56 : vector<1x5xf32>
    %59 = arith.divf %57, %58 : vector<1x5xf32>
    %60 = vector.extract_strided_slice %41 {offsets = [0, 10], sizes = [1, 5], strides = [1, 1]} : vector<1x15xf32> to vector<1x5xf32>
    %61 = vector.extract_strided_slice %43 {offsets = [0, 10], sizes = [1, 5], strides = [1, 1]} : vector<1x15xf32> to vector<1x5xf32>
    %62 = arith.mulf %51, %61 : vector<1x5xf32>
    %63 = arith.addf %60, %62 : vector<1x5xf32>
    %64 = math.tanh %63 : vector<1x5xf32>
    %cst_31 = arith.constant 1.000000e+00 : f32
    %65 = vector.broadcast %cst_31 : f32 to vector<1x5xf32>
    %66 = arith.subf %65, %59 : vector<1x5xf32>
    %67 = arith.mulf %66, %64 : vector<1x5xf32>
    %68 = arith.mulf %59, %8 : vector<1x5xf32>
    %69 = arith.addf %67, %68 : vector<1x5xf32>
    %c1_32 = arith.constant 1 : index
    %c0_33 = arith.constant 0 : index
    %c0_34 = arith.constant 0 : index
    %70 = vector.load %arg0[%c1_32, %c0_33, %c0_34] : memref<6x4x6xf32, #tpu.memory_space<vmem>>, vector<1x4x6xf32>
    %71 = vector.shape_cast %70 : vector<1x4x6xf32> to vector<4x6xf32>
    %c2 = arith.constant 2 : index
    %c0_35 = arith.constant 0 : index
    %c0_36 = arith.constant 0 : index
    %72 = vector.load %arg0[%c2, %c0_35, %c0_36] : memref<6x4x6xf32, #tpu.memory_space<vmem>>, vector<1x4x6xf32>
    %73 = vector.shape_cast %72 : vector<1x4x6xf32> to vector<4x6xf32>
    %cst_37 = arith.constant dense<0.000000e+00> : vector<20x6xf32>
    %74 = tpu.matmul %0, %71, %cst_37 {dimension_numbers = #tpu.dot_dimension_numbers<[1], [0], [0], [1], [0, 0, 1, 1], [], []>} : vector<20x4xf32>, vector<4x6xf32>, vector<20x6xf32> -> vector<20x6xf32>
    %cst_38 = arith.constant dense<0.000000e+00> : vector<20x6xf32>
    %75 = tpu.matmul %1, %73, %cst_38 {dimension_numbers = #tpu.dot_dimension_numbers<[1], [0], [0], [1], [0, 0, 1, 1], [], []>} : vector<20x4xf32>, vector<4x6xf32>, vector<20x6xf32> -> vector<20x6xf32>
    %cst_39 = arith.constant 0.000000e+00 : f32
    %76 = vector.broadcast %cst_39 : f32 to vector<20x6xf32>
    %77 = arith.cmpf one, %75, %76 : vector<20x6xf32>
    %78 = arith.extui %77 : vector<20x6xi1> to vector<20x6xi32>
    %79 = arith.sitofp %78 : vector<20x6xi32> to vector<20x6xf32>
    %80 = arith.subf %74, %75 : vector<20x6xf32>
    %81 = math.absf %80 : vector<20x6xf32>
    %82 = arith.mulf %81, %79 : vector<20x6xf32>
    %cst_40 = arith.constant dense<0.000000e+00> : vector<20xf32>
    %83 = vector.multi_reduction <add>, %82, %cst_40 [1] : vector<20x6xf32> to vector<20xf32>
    %84 = vector.shape_cast %83 : vector<20xf32> to vector<20x1xf32>
    %cst_41 = arith.constant dense<0.000000e+00> : vector<5x1xf32>
    %85 = tpu.matmul %2, %84, %cst_41 {dimension_numbers = #tpu.dot_dimension_numbers<[1], [0], [0], [1], [0, 0, 1, 1], [], []>} : vector<5x20xf32>, vector<20x1xf32>, vector<5x1xf32> -> vector<5x1xf32>
    %86 = vector.shape_cast %85 : vector<5x1xf32> to vector<1x5x1xf32>
    %cst_42 = arith.constant dense<0x7F800000> : vector<1xf32>
    %87 = vector.multi_reduction <minimumf>, %86, %cst_42 [1, 2] : vector<1x5x1xf32> to vector<1xf32>
    %88 = vector.shape_cast %87 : vector<1xf32> to vector<1x1x1xf32>
    %89 = vector.extract %88[0, 0, 0] : f32 from vector<1x1x1xf32>
    %90 = vector.broadcast %89 : f32 to vector<5x1xf32>
    %91 = arith.cmpf oeq, %85, %90 : vector<5x1xf32>
    %c5_i32_43 = arith.constant 5 : i32
    %92 = vector.broadcast %c5_i32_43 : i32 to vector<5x1xi32>
    %93 = arith.select %91, %7, %92 : vector<5x1xi1>, vector<5x1xi32>
    %94 = vector.shape_cast %93 : vector<5x1xi32> to vector<1x5x1xi32>
    %cst_44 = arith.constant dense<2147483647> : vector<1xi32>
    %95 = vector.multi_reduction <minsi>, %94, %cst_44 [1, 2] : vector<1x5x1xi32> to vector<1xi32>
    %96 = vector.shape_cast %95 : vector<1xi32> to vector<1x1x1xi32>
    %97 = vector.extract %96[0, 0, 0] : i32 from vector<1x1x1xi32>
    %c1_45 = arith.constant 1 : index
    %98 = memref.load %arg9[%c1_45] : memref<6xi32, #tpu.memory_space<smem>>
    memref.store %97, %arg9[%c1_45] : memref<6xi32, #tpu.memory_space<smem>>
    %99 = arith.index_cast %97 : i32 to index
    %c0_46 = arith.constant 0 : index
    %100 = vector.load %arg4[%99, %c0_46] : memref<5x16xf32, #tpu.memory_space<vmem>>, vector<1x16xf32>
    %cst_47 = arith.constant dense<0.000000e+00> : vector<1x15xf32>
    %101 = tpu.matmul %100, %3, %cst_47 {dimension_numbers = #tpu.dot_dimension_numbers<[1], [0], [0], [1], [0, 0, 1, 1], [], []>} : vector<1x16xf32>, vector<16x15xf32>, vector<1x15xf32> -> vector<1x15xf32>
    %102 = arith.addf %101, %5 : vector<1x15xf32>
    %cst_48 = arith.constant dense<0.000000e+00> : vector<1x15xf32>
    %103 = tpu.matmul %69, %4, %cst_48 {dimension_numbers = #tpu.dot_dimension_numbers<[1], [0], [0], [1], [0, 0, 1, 1], [], []>} : vector<1x5xf32>, vector<5x15xf32>, vector<1x15xf32> -> vector<1x15xf32>
    %104 = arith.addf %103, %6 : vector<1x15xf32>
    %105 = vector.extract_strided_slice %102 {offsets = [0, 0], sizes = [1, 5], strides = [1, 1]} : vector<1x15xf32> to vector<1x5xf32>
    %106 = vector.extract_strided_slice %104 {offsets = [0, 0], sizes = [1, 5], strides = [1, 1]} : vector<1x15xf32> to vector<1x5xf32>
    %107 = arith.addf %105, %106 : vector<1x5xf32>
    %108 = arith.negf %107 : vector<1x5xf32>
    %109 = math.exp %108 : vector<1x5xf32>
    %cst_49 = arith.constant 1.000000e+00 : f32
    %110 = vector.broadcast %cst_49 : f32 to vector<1x5xf32>
    %111 = arith.addf %110, %109 : vector<1x5xf32>
    %112 = arith.divf %110, %111 : vector<1x5xf32>
    %113 = vector.extract_strided_slice %102 {offsets = [0, 5], sizes = [1, 5], strides = [1, 1]} : vector<1x15xf32> to vector<1x5xf32>
    %114 = vector.extract_strided_slice %104 {offsets = [0, 5], sizes = [1, 5], strides = [1, 1]} : vector<1x15xf32> to vector<1x5xf32>
    %115 = arith.addf %113, %114 : vector<1x5xf32>
    %116 = arith.negf %115 : vector<1x5xf32>
    %117 = math.exp %116 : vector<1x5xf32>
    %cst_50 = arith.constant 1.000000e+00 : f32
    %118 = vector.broadcast %cst_50 : f32 to vector<1x5xf32>
    %119 = arith.addf %118, %117 : vector<1x5xf32>
    %120 = arith.divf %118, %119 : vector<1x5xf32>
    %121 = vector.extract_strided_slice %102 {offsets = [0, 10], sizes = [1, 5], strides = [1, 1]} : vector<1x15xf32> to vector<1x5xf32>
    %122 = vector.extract_strided_slice %104 {offsets = [0, 10], sizes = [1, 5], strides = [1, 1]} : vector<1x15xf32> to vector<1x5xf32>
    %123 = arith.mulf %112, %122 : vector<1x5xf32>
    %124 = arith.addf %121, %123 : vector<1x5xf32>
    %125 = math.tanh %124 : vector<1x5xf32>
    %cst_51 = arith.constant 1.000000e+00 : f32
    %126 = vector.broadcast %cst_51 : f32 to vector<1x5xf32>
    %127 = arith.subf %126, %120 : vector<1x5xf32>
    %128 = arith.mulf %127, %125 : vector<1x5xf32>
    %129 = arith.mulf %120, %69 : vector<1x5xf32>
    %130 = arith.addf %128, %129 : vector<1x5xf32>
    %c2_52 = arith.constant 2 : index
    %c0_53 = arith.constant 0 : index
    %c0_54 = arith.constant 0 : index
    %131 = vector.load %arg0[%c2_52, %c0_53, %c0_54] : memref<6x4x6xf32, #tpu.memory_space<vmem>>, vector<1x4x6xf32>
    %132 = vector.shape_cast %131 : vector<1x4x6xf32> to vector<4x6xf32>
    %c3 = arith.constant 3 : index
    %c0_55 = arith.constant 0 : index
    %c0_56 = arith.constant 0 : index
    %133 = vector.load %arg0[%c3, %c0_55, %c0_56] : memref<6x4x6xf32, #tpu.memory_space<vmem>>, vector<1x4x6xf32>
    %134 = vector.shape_cast %133 : vector<1x4x6xf32> to vector<4x6xf32>
    %cst_57 = arith.constant dense<0.000000e+00> : vector<20x6xf32>
    %135 = tpu.matmul %0, %132, %cst_57 {dimension_numbers = #tpu.dot_dimension_numbers<[1], [0], [0], [1], [0, 0, 1, 1], [], []>} : vector<20x4xf32>, vector<4x6xf32>, vector<20x6xf32> -> vector<20x6xf32>
    %cst_58 = arith.constant dense<0.000000e+00> : vector<20x6xf32>
    %136 = tpu.matmul %1, %134, %cst_58 {dimension_numbers = #tpu.dot_dimension_numbers<[1], [0], [0], [1], [0, 0, 1, 1], [], []>} : vector<20x4xf32>, vector<4x6xf32>, vector<20x6xf32> -> vector<20x6xf32>
    %cst_59 = arith.constant 0.000000e+00 : f32
    %137 = vector.broadcast %cst_59 : f32 to vector<20x6xf32>
    %138 = arith.cmpf one, %136, %137 : vector<20x6xf32>
    %139 = arith.extui %138 : vector<20x6xi1> to vector<20x6xi32>
    %140 = arith.sitofp %139 : vector<20x6xi32> to vector<20x6xf32>
    %141 = arith.subf %135, %136 : vector<20x6xf32>
    %142 = math.absf %141 : vector<20x6xf32>
    %143 = arith.mulf %142, %140 : vector<20x6xf32>
    %cst_60 = arith.constant dense<0.000000e+00> : vector<20xf32>
    %144 = vector.multi_reduction <add>, %143, %cst_60 [1] : vector<20x6xf32> to vector<20xf32>
    %145 = vector.shape_cast %144 : vector<20xf32> to vector<20x1xf32>
    %cst_61 = arith.constant dense<0.000000e+00> : vector<5x1xf32>
    %146 = tpu.matmul %2, %145, %cst_61 {dimension_numbers = #tpu.dot_dimension_numbers<[1], [0], [0], [1], [0, 0, 1, 1], [], []>} : vector<5x20xf32>, vector<20x1xf32>, vector<5x1xf32> -> vector<5x1xf32>
    %147 = vector.shape_cast %146 : vector<5x1xf32> to vector<1x5x1xf32>
    %cst_62 = arith.constant dense<0x7F800000> : vector<1xf32>
    %148 = vector.multi_reduction <minimumf>, %147, %cst_62 [1, 2] : vector<1x5x1xf32> to vector<1xf32>
    %149 = vector.shape_cast %148 : vector<1xf32> to vector<1x1x1xf32>
    %150 = vector.extract %149[0, 0, 0] : f32 from vector<1x1x1xf32>
    %151 = vector.broadcast %150 : f32 to vector<5x1xf32>
    %152 = arith.cmpf oeq, %146, %151 : vector<5x1xf32>
    %c5_i32_63 = arith.constant 5 : i32
    %153 = vector.broadcast %c5_i32_63 : i32 to vector<5x1xi32>
    %154 = arith.select %152, %7, %153 : vector<5x1xi1>, vector<5x1xi32>
    %155 = vector.shape_cast %154 : vector<5x1xi32> to vector<1x5x1xi32>
    %cst_64 = arith.constant dense<2147483647> : vector<1xi32>
    %156 = vector.multi_reduction <minsi>, %155, %cst_64 [1, 2] : vector<1x5x1xi32> to vector<1xi32>
    %157 = vector.shape_cast %156 : vector<1xi32> to vector<1x1x1xi32>
    %158 = vector.extract %157[0, 0, 0] : i32 from vector<1x1x1xi32>
    %c2_65 = arith.constant 2 : index
    %159 = memref.load %arg9[%c2_65] : memref<6xi32, #tpu.memory_space<smem>>
    memref.store %158, %arg9[%c2_65] : memref<6xi32, #tpu.memory_space<smem>>
    %160 = arith.index_cast %158 : i32 to index
    %c0_66 = arith.constant 0 : index
    %161 = vector.load %arg4[%160, %c0_66] : memref<5x16xf32, #tpu.memory_space<vmem>>, vector<1x16xf32>
    %cst_67 = arith.constant dense<0.000000e+00> : vector<1x15xf32>
    %162 = tpu.matmul %161, %3, %cst_67 {dimension_numbers = #tpu.dot_dimension_numbers<[1], [0], [0], [1], [0, 0, 1, 1], [], []>} : vector<1x16xf32>, vector<16x15xf32>, vector<1x15xf32> -> vector<1x15xf32>
    %163 = arith.addf %162, %5 : vector<1x15xf32>
    %cst_68 = arith.constant dense<0.000000e+00> : vector<1x15xf32>
    %164 = tpu.matmul %130, %4, %cst_68 {dimension_numbers = #tpu.dot_dimension_numbers<[1], [0], [0], [1], [0, 0, 1, 1], [], []>} : vector<1x5xf32>, vector<5x15xf32>, vector<1x15xf32> -> vector<1x15xf32>
    %165 = arith.addf %164, %6 : vector<1x15xf32>
    %166 = vector.extract_strided_slice %163 {offsets = [0, 0], sizes = [1, 5], strides = [1, 1]} : vector<1x15xf32> to vector<1x5xf32>
    %167 = vector.extract_strided_slice %165 {offsets = [0, 0], sizes = [1, 5], strides = [1, 1]} : vector<1x15xf32> to vector<1x5xf32>
    %168 = arith.addf %166, %167 : vector<1x5xf32>
    %169 = arith.negf %168 : vector<1x5xf32>
    %170 = math.exp %169 : vector<1x5xf32>
    %cst_69 = arith.constant 1.000000e+00 : f32
    %171 = vector.broadcast %cst_69 : f32 to vector<1x5xf32>
    %172 = arith.addf %171, %170 : vector<1x5xf32>
    %173 = arith.divf %171, %172 : vector<1x5xf32>
    %174 = vector.extract_strided_slice %163 {offsets = [0, 5], sizes = [1, 5], strides = [1, 1]} : vector<1x15xf32> to vector<1x5xf32>
    %175 = vector.extract_strided_slice %165 {offsets = [0, 5], sizes = [1, 5], strides = [1, 1]} : vector<1x15xf32> to vector<1x5xf32>
    %176 = arith.addf %174, %175 : vector<1x5xf32>
    %177 = arith.negf %176 : vector<1x5xf32>
    %178 = math.exp %177 : vector<1x5xf32>
    %cst_70 = arith.constant 1.000000e+00 : f32
    %179 = vector.broadcast %cst_70 : f32 to vector<1x5xf32>
    %180 = arith.addf %179, %178 : vector<1x5xf32>
    %181 = arith.divf %179, %180 : vector<1x5xf32>
    %182 = vector.extract_strided_slice %163 {offsets = [0, 10], sizes = [1, 5], strides = [1, 1]} : vector<1x15xf32> to vector<1x5xf32>
    %183 = vector.extract_strided_slice %165 {offsets = [0, 10], sizes = [1, 5], strides = [1, 1]} : vector<1x15xf32> to vector<1x5xf32>
    %184 = arith.mulf %173, %183 : vector<1x5xf32>
    %185 = arith.addf %182, %184 : vector<1x5xf32>
    %186 = math.tanh %185 : vector<1x5xf32>
    %cst_71 = arith.constant 1.000000e+00 : f32
    %187 = vector.broadcast %cst_71 : f32 to vector<1x5xf32>
    %188 = arith.subf %187, %181 : vector<1x5xf32>
    %189 = arith.mulf %188, %186 : vector<1x5xf32>
    %190 = arith.mulf %181, %130 : vector<1x5xf32>
    %191 = arith.addf %189, %190 : vector<1x5xf32>
    %c3_72 = arith.constant 3 : index
    %c0_73 = arith.constant 0 : index
    %c0_74 = arith.constant 0 : index
    %192 = vector.load %arg0[%c3_72, %c0_73, %c0_74] : memref<6x4x6xf32, #tpu.memory_space<vmem>>, vector<1x4x6xf32>
    %193 = vector.shape_cast %192 : vector<1x4x6xf32> to vector<4x6xf32>
    %c4 = arith.constant 4 : index
    %c0_75 = arith.constant 0 : index
    %c0_76 = arith.constant 0 : index
    %194 = vector.load %arg0[%c4, %c0_75, %c0_76] : memref<6x4x6xf32, #tpu.memory_space<vmem>>, vector<1x4x6xf32>
    %195 = vector.shape_cast %194 : vector<1x4x6xf32> to vector<4x6xf32>
    %cst_77 = arith.constant dense<0.000000e+00> : vector<20x6xf32>
    %196 = tpu.matmul %0, %193, %cst_77 {dimension_numbers = #tpu.dot_dimension_numbers<[1], [0], [0], [1], [0, 0, 1, 1], [], []>} : vector<20x4xf32>, vector<4x6xf32>, vector<20x6xf32> -> vector<20x6xf32>
    %cst_78 = arith.constant dense<0.000000e+00> : vector<20x6xf32>
    %197 = tpu.matmul %1, %195, %cst_78 {dimension_numbers = #tpu.dot_dimension_numbers<[1], [0], [0], [1], [0, 0, 1, 1], [], []>} : vector<20x4xf32>, vector<4x6xf32>, vector<20x6xf32> -> vector<20x6xf32>
    %cst_79 = arith.constant 0.000000e+00 : f32
    %198 = vector.broadcast %cst_79 : f32 to vector<20x6xf32>
    %199 = arith.cmpf one, %197, %198 : vector<20x6xf32>
    %200 = arith.extui %199 : vector<20x6xi1> to vector<20x6xi32>
    %201 = arith.sitofp %200 : vector<20x6xi32> to vector<20x6xf32>
    %202 = arith.subf %196, %197 : vector<20x6xf32>
    %203 = math.absf %202 : vector<20x6xf32>
    %204 = arith.mulf %203, %201 : vector<20x6xf32>
    %cst_80 = arith.constant dense<0.000000e+00> : vector<20xf32>
    %205 = vector.multi_reduction <add>, %204, %cst_80 [1] : vector<20x6xf32> to vector<20xf32>
    %206 = vector.shape_cast %205 : vector<20xf32> to vector<20x1xf32>
    %cst_81 = arith.constant dense<0.000000e+00> : vector<5x1xf32>
    %207 = tpu.matmul %2, %206, %cst_81 {dimension_numbers = #tpu.dot_dimension_numbers<[1], [0], [0], [1], [0, 0, 1, 1], [], []>} : vector<5x20xf32>, vector<20x1xf32>, vector<5x1xf32> -> vector<5x1xf32>
    %208 = vector.shape_cast %207 : vector<5x1xf32> to vector<1x5x1xf32>
    %cst_82 = arith.constant dense<0x7F800000> : vector<1xf32>
    %209 = vector.multi_reduction <minimumf>, %208, %cst_82 [1, 2] : vector<1x5x1xf32> to vector<1xf32>
    %210 = vector.shape_cast %209 : vector<1xf32> to vector<1x1x1xf32>
    %211 = vector.extract %210[0, 0, 0] : f32 from vector<1x1x1xf32>
    %212 = vector.broadcast %211 : f32 to vector<5x1xf32>
    %213 = arith.cmpf oeq, %207, %212 : vector<5x1xf32>
    %c5_i32_83 = arith.constant 5 : i32
    %214 = vector.broadcast %c5_i32_83 : i32 to vector<5x1xi32>
    %215 = arith.select %213, %7, %214 : vector<5x1xi1>, vector<5x1xi32>
    %216 = vector.shape_cast %215 : vector<5x1xi32> to vector<1x5x1xi32>
    %cst_84 = arith.constant dense<2147483647> : vector<1xi32>
    %217 = vector.multi_reduction <minsi>, %216, %cst_84 [1, 2] : vector<1x5x1xi32> to vector<1xi32>
    %218 = vector.shape_cast %217 : vector<1xi32> to vector<1x1x1xi32>
    %219 = vector.extract %218[0, 0, 0] : i32 from vector<1x1x1xi32>
    %c3_85 = arith.constant 3 : index
    %220 = memref.load %arg9[%c3_85] : memref<6xi32, #tpu.memory_space<smem>>
    memref.store %219, %arg9[%c3_85] : memref<6xi32, #tpu.memory_space<smem>>
    %221 = arith.index_cast %219 : i32 to index
    %c0_86 = arith.constant 0 : index
    %222 = vector.load %arg4[%221, %c0_86] : memref<5x16xf32, #tpu.memory_space<vmem>>, vector<1x16xf32>
    %cst_87 = arith.constant dense<0.000000e+00> : vector<1x15xf32>
    %223 = tpu.matmul %222, %3, %cst_87 {dimension_numbers = #tpu.dot_dimension_numbers<[1], [0], [0], [1], [0, 0, 1, 1], [], []>} : vector<1x16xf32>, vector<16x15xf32>, vector<1x15xf32> -> vector<1x15xf32>
    %224 = arith.addf %223, %5 : vector<1x15xf32>
    %cst_88 = arith.constant dense<0.000000e+00> : vector<1x15xf32>
    %225 = tpu.matmul %191, %4, %cst_88 {dimension_numbers = #tpu.dot_dimension_numbers<[1], [0], [0], [1], [0, 0, 1, 1], [], []>} : vector<1x5xf32>, vector<5x15xf32>, vector<1x15xf32> -> vector<1x15xf32>
    %226 = arith.addf %225, %6 : vector<1x15xf32>
    %227 = vector.extract_strided_slice %224 {offsets = [0, 0], sizes = [1, 5], strides = [1, 1]} : vector<1x15xf32> to vector<1x5xf32>
    %228 = vector.extract_strided_slice %226 {offsets = [0, 0], sizes = [1, 5], strides = [1, 1]} : vector<1x15xf32> to vector<1x5xf32>
    %229 = arith.addf %227, %228 : vector<1x5xf32>
    %230 = arith.negf %229 : vector<1x5xf32>
    %231 = math.exp %230 : vector<1x5xf32>
    %cst_89 = arith.constant 1.000000e+00 : f32
    %232 = vector.broadcast %cst_89 : f32 to vector<1x5xf32>
    %233 = arith.addf %232, %231 : vector<1x5xf32>
    %234 = arith.divf %232, %233 : vector<1x5xf32>
    %235 = vector.extract_strided_slice %224 {offsets = [0, 5], sizes = [1, 5], strides = [1, 1]} : vector<1x15xf32> to vector<1x5xf32>
    %236 = vector.extract_strided_slice %226 {offsets = [0, 5], sizes = [1, 5], strides = [1, 1]} : vector<1x15xf32> to vector<1x5xf32>
    %237 = arith.addf %235, %236 : vector<1x5xf32>
    %238 = arith.negf %237 : vector<1x5xf32>
    %239 = math.exp %238 : vector<1x5xf32>
    %cst_90 = arith.constant 1.000000e+00 : f32
    %240 = vector.broadcast %cst_90 : f32 to vector<1x5xf32>
    %241 = arith.addf %240, %239 : vector<1x5xf32>
    %242 = arith.divf %240, %241 : vector<1x5xf32>
    %243 = vector.extract_strided_slice %224 {offsets = [0, 10], sizes = [1, 5], strides = [1, 1]} : vector<1x15xf32> to vector<1x5xf32>
    %244 = vector.extract_strided_slice %226 {offsets = [0, 10], sizes = [1, 5], strides = [1, 1]} : vector<1x15xf32> to vector<1x5xf32>
    %245 = arith.mulf %234, %244 : vector<1x5xf32>
    %246 = arith.addf %243, %245 : vector<1x5xf32>
    %247 = math.tanh %246 : vector<1x5xf32>
    %cst_91 = arith.constant 1.000000e+00 : f32
    %248 = vector.broadcast %cst_91 : f32 to vector<1x5xf32>
    %249 = arith.subf %248, %242 : vector<1x5xf32>
    %250 = arith.mulf %249, %247 : vector<1x5xf32>
    %251 = arith.mulf %242, %191 : vector<1x5xf32>
    %252 = arith.addf %250, %251 : vector<1x5xf32>
    %c4_92 = arith.constant 4 : index
    %c0_93 = arith.constant 0 : index
    %c0_94 = arith.constant 0 : index
    %253 = vector.load %arg0[%c4_92, %c0_93, %c0_94] : memref<6x4x6xf32, #tpu.memory_space<vmem>>, vector<1x4x6xf32>
    %254 = vector.shape_cast %253 : vector<1x4x6xf32> to vector<4x6xf32>
    %c5 = arith.constant 5 : index
    %c0_95 = arith.constant 0 : index
    %c0_96 = arith.constant 0 : index
    %255 = vector.load %arg0[%c5, %c0_95, %c0_96] : memref<6x4x6xf32, #tpu.memory_space<vmem>>, vector<1x4x6xf32>
    %256 = vector.shape_cast %255 : vector<1x4x6xf32> to vector<4x6xf32>
    %cst_97 = arith.constant dense<0.000000e+00> : vector<20x6xf32>
    %257 = tpu.matmul %0, %254, %cst_97 {dimension_numbers = #tpu.dot_dimension_numbers<[1], [0], [0], [1], [0, 0, 1, 1], [], []>} : vector<20x4xf32>, vector<4x6xf32>, vector<20x6xf32> -> vector<20x6xf32>
    %cst_98 = arith.constant dense<0.000000e+00> : vector<20x6xf32>
    %258 = tpu.matmul %1, %256, %cst_98 {dimension_numbers = #tpu.dot_dimension_numbers<[1], [0], [0], [1], [0, 0, 1, 1], [], []>} : vector<20x4xf32>, vector<4x6xf32>, vector<20x6xf32> -> vector<20x6xf32>
    %cst_99 = arith.constant 0.000000e+00 : f32
    %259 = vector.broadcast %cst_99 : f32 to vector<20x6xf32>
    %260 = arith.cmpf one, %258, %259 : vector<20x6xf32>
    %261 = arith.extui %260 : vector<20x6xi1> to vector<20x6xi32>
    %262 = arith.sitofp %261 : vector<20x6xi32> to vector<20x6xf32>
    %263 = arith.subf %257, %258 : vector<20x6xf32>
    %264 = math.absf %263 : vector<20x6xf32>
    %265 = arith.mulf %264, %262 : vector<20x6xf32>
    %cst_100 = arith.constant dense<0.000000e+00> : vector<20xf32>
    %266 = vector.multi_reduction <add>, %265, %cst_100 [1] : vector<20x6xf32> to vector<20xf32>
    %267 = vector.shape_cast %266 : vector<20xf32> to vector<20x1xf32>
    %cst_101 = arith.constant dense<0.000000e+00> : vector<5x1xf32>
    %268 = tpu.matmul %2, %267, %cst_101 {dimension_numbers = #tpu.dot_dimension_numbers<[1], [0], [0], [1], [0, 0, 1, 1], [], []>} : vector<5x20xf32>, vector<20x1xf32>, vector<5x1xf32> -> vector<5x1xf32>
    %269 = vector.shape_cast %268 : vector<5x1xf32> to vector<1x5x1xf32>
    %cst_102 = arith.constant dense<0x7F800000> : vector<1xf32>
    %270 = vector.multi_reduction <minimumf>, %269, %cst_102 [1, 2] : vector<1x5x1xf32> to vector<1xf32>
    %271 = vector.shape_cast %270 : vector<1xf32> to vector<1x1x1xf32>
    %272 = vector.extract %271[0, 0, 0] : f32 from vector<1x1x1xf32>
    %273 = vector.broadcast %272 : f32 to vector<5x1xf32>
    %274 = arith.cmpf oeq, %268, %273 : vector<5x1xf32>
    %c5_i32_103 = arith.constant 5 : i32
    %275 = vector.broadcast %c5_i32_103 : i32 to vector<5x1xi32>
    %276 = arith.select %274, %7, %275 : vector<5x1xi1>, vector<5x1xi32>
    %277 = vector.shape_cast %276 : vector<5x1xi32> to vector<1x5x1xi32>
    %cst_104 = arith.constant dense<2147483647> : vector<1xi32>
    %278 = vector.multi_reduction <minsi>, %277, %cst_104 [1, 2] : vector<1x5x1xi32> to vector<1xi32>
    %279 = vector.shape_cast %278 : vector<1xi32> to vector<1x1x1xi32>
    %280 = vector.extract %279[0, 0, 0] : i32 from vector<1x1x1xi32>
    %c4_105 = arith.constant 4 : index
    %281 = memref.load %arg9[%c4_105] : memref<6xi32, #tpu.memory_space<smem>>
    memref.store %280, %arg9[%c4_105] : memref<6xi32, #tpu.memory_space<smem>>
    %282 = arith.index_cast %280 : i32 to index
    %c0_106 = arith.constant 0 : index
    %283 = vector.load %arg4[%282, %c0_106] : memref<5x16xf32, #tpu.memory_space<vmem>>, vector<1x16xf32>
    %cst_107 = arith.constant dense<0.000000e+00> : vector<1x15xf32>
    %284 = tpu.matmul %283, %3, %cst_107 {dimension_numbers = #tpu.dot_dimension_numbers<[1], [0], [0], [1], [0, 0, 1, 1], [], []>} : vector<1x16xf32>, vector<16x15xf32>, vector<1x15xf32> -> vector<1x15xf32>
    %285 = arith.addf %284, %5 : vector<1x15xf32>
    %cst_108 = arith.constant dense<0.000000e+00> : vector<1x15xf32>
    %286 = tpu.matmul %252, %4, %cst_108 {dimension_numbers = #tpu.dot_dimension_numbers<[1], [0], [0], [1], [0, 0, 1, 1], [], []>} : vector<1x5xf32>, vector<5x15xf32>, vector<1x15xf32> -> vector<1x15xf32>
    %287 = arith.addf %286, %6 : vector<1x15xf32>
    %288 = vector.extract_strided_slice %285 {offsets = [0, 0], sizes = [1, 5], strides = [1, 1]} : vector<1x15xf32> to vector<1x5xf32>
    %289 = vector.extract_strided_slice %287 {offsets = [0, 0], sizes = [1, 5], strides = [1, 1]} : vector<1x15xf32> to vector<1x5xf32>
    %290 = arith.addf %288, %289 : vector<1x5xf32>
    %291 = arith.negf %290 : vector<1x5xf32>
    %292 = math.exp %291 : vector<1x5xf32>
    %cst_109 = arith.constant 1.000000e+00 : f32
    %293 = vector.broadcast %cst_109 : f32 to vector<1x5xf32>
    %294 = arith.addf %293, %292 : vector<1x5xf32>
    %295 = arith.divf %293, %294 : vector<1x5xf32>
    %296 = vector.extract_strided_slice %285 {offsets = [0, 5], sizes = [1, 5], strides = [1, 1]} : vector<1x15xf32> to vector<1x5xf32>
    %297 = vector.extract_strided_slice %287 {offsets = [0, 5], sizes = [1, 5], strides = [1, 1]} : vector<1x15xf32> to vector<1x5xf32>
    %298 = arith.addf %296, %297 : vector<1x5xf32>
    %299 = arith.negf %298 : vector<1x5xf32>
    %300 = math.exp %299 : vector<1x5xf32>
    %cst_110 = arith.constant 1.000000e+00 : f32
    %301 = vector.broadcast %cst_110 : f32 to vector<1x5xf32>
    %302 = arith.addf %301, %300 : vector<1x5xf32>
    %303 = arith.divf %301, %302 : vector<1x5xf32>
    %304 = vector.extract_strided_slice %285 {offsets = [0, 10], sizes = [1, 5], strides = [1, 1]} : vector<1x15xf32> to vector<1x5xf32>
    %305 = vector.extract_strided_slice %287 {offsets = [0, 10], sizes = [1, 5], strides = [1, 1]} : vector<1x15xf32> to vector<1x5xf32>
    %306 = arith.mulf %295, %305 : vector<1x5xf32>
    %307 = arith.addf %304, %306 : vector<1x5xf32>
    %308 = math.tanh %307 : vector<1x5xf32>
    %cst_111 = arith.constant 1.000000e+00 : f32
    %309 = vector.broadcast %cst_111 : f32 to vector<1x5xf32>
    %310 = arith.subf %309, %303 : vector<1x5xf32>
    %311 = arith.mulf %310, %308 : vector<1x5xf32>
    %312 = arith.mulf %303, %252 : vector<1x5xf32>
    %313 = arith.addf %311, %312 : vector<1x5xf32>
    %c5_112 = arith.constant 5 : index
    %c0_113 = arith.constant 0 : index
    %c0_114 = arith.constant 0 : index
    %314 = vector.load %arg0[%c5_112, %c0_113, %c0_114] : memref<6x4x6xf32, #tpu.memory_space<vmem>>, vector<1x4x6xf32>
    %315 = vector.shape_cast %314 : vector<1x4x6xf32> to vector<4x6xf32>
    %cst_115 = arith.constant dense<0.000000e+00> : vector<4xf32>
    %316 = vector.multi_reduction <add>, %315, %cst_115 [1] : vector<4x6xf32> to vector<4xf32>
    %317 = vector.shape_cast %316 : vector<4xf32> to vector<4x1xf32>
    %cst_116 = arith.constant 6.000000e+00 : f32
    %318 = vector.broadcast %cst_116 : f32 to vector<4x1xf32>
    %319 = arith.divf %317, %318 : vector<4x1xf32>
    %320 = vector.broadcast %319 : vector<4x1xf32> to vector<4x6xf32>
    %321 = arith.subf %315, %320 : vector<4x6xf32>
    %322 = tpu.transpose %321, [1, 0] : vector<4x6xf32> -> vector<6x4xf32>
    %cst_117 = arith.constant dense<0.000000e+00> : vector<4x4xf32>
    %323 = tpu.matmul %321, %322, %cst_117 {dimension_numbers = #tpu.dot_dimension_numbers<[1], [0], [0], [1], [0, 0, 1, 1], [], []>} : vector<4x6xf32>, vector<6x4xf32>, vector<4x4xf32> -> vector<4x4xf32>
    %cst_118 = arith.constant 5.000000e+00 : f32
    %324 = vector.broadcast %cst_118 : f32 to vector<4x4xf32>
    %325 = arith.divf %323, %324 : vector<4x4xf32>
    %326 = vector.extract_strided_slice %325 {offsets = [0, 0], sizes = [1, 4], strides = [1, 1]} : vector<4x4xf32> to vector<1x4xf32>
    %c0_119 = arith.constant 0 : index
    %c0_120 = arith.constant 0 : index
    %327 = vector.load %arg5[%c0_119, %c0_120] : memref<16x15xf32, #tpu.memory_space<vmem>>, vector<4x15xf32>
    %cst_121 = arith.constant dense<0.000000e+00> : vector<1x15xf32>
    %328 = tpu.matmul %326, %327, %cst_121 {dimension_numbers = #tpu.dot_dimension_numbers<[1], [0], [0], [1], [0, 0, 1, 1], [], []>} : vector<1x4xf32>, vector<4x15xf32>, vector<1x15xf32> -> vector<1x15xf32>
    %329 = arith.addf %5, %328 : vector<1x15xf32>
    %330 = vector.extract_strided_slice %325 {offsets = [1, 0], sizes = [1, 4], strides = [1, 1]} : vector<4x4xf32> to vector<1x4xf32>
    %c4_122 = arith.constant 4 : index
    %c0_123 = arith.constant 0 : index
    %331 = vector.load %arg5[%c4_122, %c0_123] : memref<16x15xf32, #tpu.memory_space<vmem>>, vector<4x15xf32>
    %cst_124 = arith.constant dense<0.000000e+00> : vector<1x15xf32>
    %332 = tpu.matmul %330, %331, %cst_124 {dimension_numbers = #tpu.dot_dimension_numbers<[1], [0], [0], [1], [0, 0, 1, 1], [], []>} : vector<1x4xf32>, vector<4x15xf32>, vector<1x15xf32> -> vector<1x15xf32>
    %333 = arith.addf %329, %332 : vector<1x15xf32>
    %334 = vector.extract_strided_slice %325 {offsets = [2, 0], sizes = [1, 4], strides = [1, 1]} : vector<4x4xf32> to vector<1x4xf32>
    %c8 = arith.constant 8 : index
    %c0_125 = arith.constant 0 : index
    %335 = vector.load %arg5[%c8, %c0_125] : memref<16x15xf32, #tpu.memory_space<vmem>>, vector<4x15xf32>
    %cst_126 = arith.constant dense<0.000000e+00> : vector<1x15xf32>
    %336 = tpu.matmul %334, %335, %cst_126 {dimension_numbers = #tpu.dot_dimension_numbers<[1], [0], [0], [1], [0, 0, 1, 1], [], []>} : vector<1x4xf32>, vector<4x15xf32>, vector<1x15xf32> -> vector<1x15xf32>
    %337 = arith.addf %333, %336 : vector<1x15xf32>
    %338 = vector.extract_strided_slice %325 {offsets = [3, 0], sizes = [1, 4], strides = [1, 1]} : vector<4x4xf32> to vector<1x4xf32>
    %c12 = arith.constant 12 : index
    %c0_127 = arith.constant 0 : index
    %339 = vector.load %arg5[%c12, %c0_127] : memref<16x15xf32, #tpu.memory_space<vmem>>, vector<4x15xf32>
    %cst_128 = arith.constant dense<0.000000e+00> : vector<1x15xf32>
    %340 = tpu.matmul %338, %339, %cst_128 {dimension_numbers = #tpu.dot_dimension_numbers<[1], [0], [0], [1], [0, 0, 1, 1], [], []>} : vector<1x4xf32>, vector<4x15xf32>, vector<1x15xf32> -> vector<1x15xf32>
    %341 = arith.addf %337, %340 : vector<1x15xf32>
    %cst_129 = arith.constant dense<0.000000e+00> : vector<1x15xf32>
    %342 = tpu.matmul %313, %4, %cst_129 {dimension_numbers = #tpu.dot_dimension_numbers<[1], [0], [0], [1], [0, 0, 1, 1], [], []>} : vector<1x5xf32>, vector<5x15xf32>, vector<1x15xf32> -> vector<1x15xf32>
    %343 = arith.addf %342, %6 : vector<1x15xf32>
    %344 = vector.extract_strided_slice %341 {offsets = [0, 0], sizes = [1, 5], strides = [1, 1]} : vector<1x15xf32> to vector<1x5xf32>
    %345 = vector.extract_strided_slice %343 {offsets = [0, 0], sizes = [1, 5], strides = [1, 1]} : vector<1x15xf32> to vector<1x5xf32>
    %346 = arith.addf %344, %345 : vector<1x5xf32>
    %347 = arith.negf %346 : vector<1x5xf32>
    %348 = math.exp %347 : vector<1x5xf32>
    %cst_130 = arith.constant 1.000000e+00 : f32
    %349 = vector.broadcast %cst_130 : f32 to vector<1x5xf32>
    %350 = arith.addf %349, %348 : vector<1x5xf32>
    %351 = arith.divf %349, %350 : vector<1x5xf32>
    %352 = vector.extract_strided_slice %341 {offsets = [0, 5], sizes = [1, 5], strides = [1, 1]} : vector<1x15xf32> to vector<1x5xf32>
    %353 = vector.extract_strided_slice %343 {offsets = [0, 5], sizes = [1, 5], strides = [1, 1]} : vector<1x15xf32> to vector<1x5xf32>
    %354 = arith.addf %352, %353 : vector<1x5xf32>
    %355 = arith.negf %354 : vector<1x5xf32>
    %356 = math.exp %355 : vector<1x5xf32>
    %cst_131 = arith.constant 1.000000e+00 : f32
    %357 = vector.broadcast %cst_131 : f32 to vector<1x5xf32>
    %358 = arith.addf %357, %356 : vector<1x5xf32>
    %359 = arith.divf %357, %358 : vector<1x5xf32>
    %360 = vector.extract_strided_slice %341 {offsets = [0, 10], sizes = [1, 5], strides = [1, 1]} : vector<1x15xf32> to vector<1x5xf32>
    %361 = vector.extract_strided_slice %343 {offsets = [0, 10], sizes = [1, 5], strides = [1, 1]} : vector<1x15xf32> to vector<1x5xf32>
    %362 = arith.mulf %351, %361 : vector<1x5xf32>
    %363 = arith.addf %360, %362 : vector<1x5xf32>
    %364 = math.tanh %363 : vector<1x5xf32>
    %cst_132 = arith.constant 1.000000e+00 : f32
    %365 = vector.broadcast %cst_132 : f32 to vector<1x5xf32>
    %366 = arith.subf %365, %359 : vector<1x5xf32>
    %367 = arith.mulf %366, %364 : vector<1x5xf32>
    %368 = arith.mulf %359, %313 : vector<1x5xf32>
    %369 = arith.addf %367, %368 : vector<1x5xf32>
    %370 = tpu.iota {dimensions = array<i32: 1>} : vector<1x5xi32>
    %371 = vector.shape_cast %369 : vector<1x5xf32> to vector<1x1x5xf32>
    %cst_133 = arith.constant dense<0xFF800000> : vector<1xf32>
    %372 = vector.multi_reduction <maximumf>, %371, %cst_133 [1, 2] : vector<1x1x5xf32> to vector<1xf32>
    %373 = vector.shape_cast %372 : vector<1xf32> to vector<1x1x1xf32>
    %374 = vector.extract %373[0, 0, 0] : f32 from vector<1x1x1xf32>
    %375 = vector.broadcast %374 : f32 to vector<1x5xf32>
    %376 = arith.cmpf oeq, %369, %375 : vector<1x5xf32>
    %c5_i32_134 = arith.constant 5 : i32
    %377 = vector.broadcast %c5_i32_134 : i32 to vector<1x5xi32>
    %378 = arith.select %376, %370, %377 : vector<1x5xi1>, vector<1x5xi32>
    %379 = vector.shape_cast %378 : vector<1x5xi32> to vector<1x1x5xi32>
    %cst_135 = arith.constant dense<2147483647> : vector<1xi32>
    %380 = vector.multi_reduction <minsi>, %379, %cst_135 [1, 2] : vector<1x1x5xi32> to vector<1xi32>
    %381 = vector.shape_cast %380 : vector<1xi32> to vector<1x1x1xi32>
    %382 = vector.extract %381[0, 0, 0] : i32 from vector<1x1x1xi32>
    %c5_136 = arith.constant 5 : index
    %383 = memref.load %arg9[%c5_136] : memref<6xi32, #tpu.memory_space<smem>>
    memref.store %382, %arg9[%c5_136] : memref<6xi32, #tpu.memory_space<smem>>
    return
  }
}

</mosaic_0001>

<bundles_post_ra>
// kernel: tpu_custom_call.1
= control target key start
LH: loop header
LB: loop body
LE: loop exit
PB: predicated region body
PF: predicated region fallthrough
CT: control target
= control target key end

     0   :  { %14 = vsyncpa [#allocation3], 0  ;;  %s2230_s0 = inlined_call_operand.vmem [shape: f32[6,4,6], index: 0, kind: input, shape index: {}]   ;;  %s2231_s1 = inlined_call_operand.vmem [shape: f32[20,4], index: 1, kind: input, shape index: {}]   ;;  %s2232_s2 = inlined_call_operand.vmem [shape: f32[20,4], index: 2, kind: input, shape index: {}]   ;;  %s2233_s3 = inlined_call_operand.vmem [shape: f32[5,20], index: 3, kind: input, shape index: {}]   ;;  %s2234_s4 = inlined_call_operand.hbm [shape: f32[5,16], index: 4, kind: input, shape index: {}]   ;;  %s2235_s5 = inlined_call_operand.vmem [shape: f32[16,15], index: 5, kind: input, shape index: {}]   ;;  %s2236_s6 = inlined_call_operand.vmem [shape: f32[5,15], index: 6, kind: input, shape index: {}]   ;;  %s2237_s7 = inlined_call_operand.vmem [shape: f32[1,15], index: 7, kind: input, shape index: {}]   ;;  %s2238_s8 = inlined_call_operand.vmem [shape: f32[1,15], index: 8, kind: input, shape index: {}]   ;;  %s2239_s9 = inlined_call_operand.hbm [shape: s32[6], index: 9, kind: output, shape index: {}]  }
   0x1   :  { %15 = vsyncpa [#allocation4], 0  ;;  %s29_s11 = sshll.u32 %s2234_s4, 4  ;;  %s1807_s12 = smov [#allocation2]   ;;  %s30_s11 = int_to_ptr.hbm [resolvable:$true] %s29_s11 }
   0x2   :  { %s31_s13 = sshll.u32 %s1807_s12, 4  ;;  %s32_s13 = int_to_ptr.vmem [resolvable:$true] %s31_s13 }
   0x3   :  { %34 = dma.hbm_to_vmem [thread:$0]  %s30_s11, 128, %s32_s13, [#allocation3]  }
   0x4   :  { %1803 = dma.done.wait [#allocation3], 128  }
   0x5   :  { %1804 = vsyncadd [#allocation3], 4294967168  ;;  %vm74_vm0 = vcmask 1043456   ;;  %vm64_vm1 = vcmask 31744   ;;  %v61_v0 = vld [vmem:[%s2230_s0] sm:$0xf]  ;;  %v59_v43 = vlaneseq }
   0x6   :  { %v1578_v1 = vld [vmem:[%s2230_s0 + $0x4] sm:$0xf]  ;;  %1579 = vmatpush.msk.msra.mxu0 %vm74_vm0, %v61_v0  ;;  %v1894_v4 = vld [vmem:[%s2231_s1 + $0x8] sm:$0xff]  ;;  %v1908_v6 = vld [vmem:[%s2231_s1 + $0x10] sm:$0xf]  ;;  %v1808_v12 = vmov 0.0  }
   0x7   :  { %v1878_v2 = vld [vmem:[%s2231_s1] sm:$0xff]  ;;  %1583 = vmatpush.msk.msra.mxu1 %vm74_vm0, %v1578_v1  ;;  %v1899_v5 = vld [vmem:[%s2232_s2 + $0x8] sm:$0xff]  ;;  %v1913_v7 = vld [vmem:[%s2232_s2 + $0x10] sm:$0xf]  ;;  %vm160_vm3 = vcmask 48128   ;;  %vm167_vm5 = vcmask 44032  }
   0x8   :  { %v1885_v3 = vld [vmem:[%s2232_s2] sm:$0xff]  ;;  %1580 = vmatmul.msk.f32.vlgmr.msra.gmra.mxu0 %vm64_vm1, %v1878_v2  ;;  %vm171_vm7 = vcmask 162816   ;;  %vm198_vm8 = vcmask 4096   ;;  %v1935_v44 = vshrl.u32 %v59_v43, 7  ;;  %v1942_v1 = vld [vmem:[%s2235_s5 + $0x8] sm:$0xff]  ;;  %vm269_vm14 = vcmask 1044480  }
   0x9   :  { %1584 = vmatmul.msk.f32.vlgmr.msra.gmra.mxu1 %vm64_vm1, %v1885_v3  ;;  %v1929_v32 = vld [vmem:[%s2233_s3] sm:$0x1f]  ;;  %259 = vmatpush.msra.mxu3 %v1942_v1  ;;  %vm241_vm15 = vcmask 130048   ;;  %s1809_s24 = smov 118   ;;  %s1810_s28 = smov 10  }
   0xa   :  { %502 = vmatpush.msrb.mxu1 %v1942_v1  ;;  %s1811_s29 = smov 123  }
  0x10   :  { %1581 = vmatmul.msk.f32.gmra.mxu0 %vm64_vm1, %v1894_v4 }
  0x11   :  { %1585 = vmatmul.msk.f32.gmra.mxu1 %vm64_vm1, %v1899_v5 }
  0x18   :  { %1582 = vmatmul.msk.f32.gmra.mxu0 %vm64_vm1, %v1908_v6 }
  0x19   :  { %1586 = vmatmul.msk.f32.gmra.mxu1 %vm64_vm1, %v1913_v7 }
  0x85   :  { %v95_v8 = vpop.f32.mrf.mxu0 }
  0x86   :  { %v133_v9 = vpop.f32.mrf.mxu1 }
  0x87   :  { %vm142_vm2 = vcmp.ne.f32.partialorder %v133_v9, 0.0  ;;  %v151_v10 = vsub.f32 %v95_v8, %v133_v9  ;;  %v1949_v8 = vld [vmem:[%s2235_s5] sm:$0xff] }
  0x88   :  { %v1587_v13 = vsel %vm142_vm2, 1.0, %v1808_v12  ;;  %260 = vmatpush.msra.mxu3 %v1949_v8  ;;  %503 = vmatpush.msrb.mxu1 %v1949_v8  ;;  %v1956_v9 = vld [vmem:[%s2236_s6] sm:$0x1f] }
  0x89   :  { %v154_v11 = vand.u32 2147483647, %v151_v10  ;;  %v1595_v10 = vld [vmem:[%s2230_s0 + $0x4] sm:$0xf] }
  0x8a   :  { %1593 = vmatpush.msk.msrb.mxu3 %vm269_vm14, %v1956_v9 }
  0x8b   :  { %v157_v14 = vmul.f32 %v1587_v13, %v154_v11  ;;  %v1596_v11 = vld [vmem:[%s2230_s0 + $0x8] sm:$0xf] }
  0x8d   :  { %v161_v15 = vsel %vm160_vm3, %v157_v14, 0.0  ;;  %v98_v17 = vpop.f32.mrf.mxu0 }
  0x8e   :  { %v136_v16 = vpop.f32.mrf.mxu1  ;;  %162 = vadd.xlane.f32.xlu1 %v161_v15 }
  0x8f   :  { %v152_v21 = vsub.f32 %v98_v17, %v136_v16  ;;  %vm143_vm6 = vcmp.ne.f32.partialorder %v136_v16, 0.0 }
  0x90   :  { %v1588_v27 = vsel %vm143_vm6, 1.0, %v1808_v12 }
  0x91   :  { %v155_v25 = vand.u32 2147483647, %v152_v21 }
  0x93   :  { %v158_v28 = vmul.f32 %v1588_v27, %v155_v25 }
  0x95   :  { %v101_v18 = vpop.f32.mrf.mxu0  ;;  %v164_v29 = vsel %vm160_vm3, %v158_v28, 0.0 }
  0x96   :  { %v139_v19 = vpop.f32.mrf.mxu1 }
  0x97   :  { %vm144_vm4 = vcmp.ne.f32.partialorder %v139_v19, 0.0  ;;  %v153_v20 = vsub.f32 %v101_v18, %v139_v19 }
  0x98   :  { %v1589_v23 = vsel %vm144_vm4, 1.0, %v1808_v12 }
  0x99   :  { %v156_v22 = vand.u32 2147483647, %v153_v20 }
  0x9b   :  { %v159_v24 = vmul.f32 %v1589_v23, %v156_v22 }
  0x9d   :  { %v168_v26 = vsel %vm167_vm5, %v159_v24, 0.0 }
  0x9e   :  { %169 = vadd.xlane.f32.xlu0 %v168_v26 }
  0xa6   :  { %165 = vadd.xlane.f32.xlu0 %v164_v29 }
 0x101   :  { %v163_v33 = vpop.xlane.xlu1 %162 }
 0x111   :  { %v170_v30 = vpop.xlane.xlu0 %169 }
 0x112   :  { %1590 = vmatpush.msk.msra.mxu2 %vm74_vm0, %v170_v30 }
 0x119   :  { %v166_v31 = vpop.xlane.xlu0 %165 }
 0x11a   :  { %192 = vmatpush.msra.mxu2 %v166_v31 }
 0x11c   :  { %193 = vmatpush.msra.mxu2 %v163_v33 }
 0x11d   :  { %1591 = vmatmul.msk.f32.vlgmr.msra.gmra.mxu2 %vm171_vm7, %v1929_v32 }
 0x11e   :  { %1597 = vmatpush.msk.msrb.mxu2 %vm74_vm0, %v1595_v10 }
 0x125   :  { %1598 = vmatmul.msk.f32.vlgmr.msrb.gmra.mxu2 %vm64_vm1, %v1878_v2 }
 0x12d   :  { %1599 = vmatmul.msk.f32.gmra.mxu2 %vm64_vm1, %v1894_v4 }
 0x135   :  { %1600 = vmatmul.msk.f32.gmra.mxu2 %vm64_vm1, %v1908_v6 }
 0x1a0   :  { %v195_v34 = vpop.f32.mrf.mxu2 }
 0x1a1   :  { %v199_v35 = vsel %vm198_vm8, %v195_v34, inf }
 0x1a2   :  { %200 = vmin.xlane.f32.xlu1 %v199_v35 }
 0x1a8   :  { %v355_v16 = vpop.f32.mrf.mxu2 }
 0x1b0   :  { %v358_v21 = vpop.f32.mrf.mxu2 }
 0x1b8   :  { %v361_v29 = vpop.f32.mrf.mxu2 }
 0x215   :  { %v201_v36 = vpop.xlane.xlu1 %200 }
 0x216   :  { %v202_v37 = vrot.slane %v201_v36, 4 }
 0x218   :  { %v203_v38 = vmin.f32 %v201_v36, %v202_v37 }
 0x21a   :  { %v204_v39 = vrot.slane %v203_v38, 2 }
 0x21c   :  { %v205_v40 = vmin.f32 %v203_v38, %v204_v39 }
 0x21e   :  { %v206_v41 = vrot.slane %v205_v40, 1 }
 0x220   :  { %v207_v42 = vmin.f32 %v205_v40, %v206_v41 }
 0x222   :  { %1685 = vpush %v207_v42 }
 0x253   :  { %s1686_s10 = spop %1685 }
 0x254   :  { %v209_v45 = vstv %s1686_s10 }
 0x255   :  { %vm210_vm9 = vcmp.eq.f32.partialorder %v195_v34, %v209_v45  ;;  %v1999_v45 = vld [vmem:[%s2238_s8] sm:$0x1] }
 0x256   :  { %v211_v46 = vsel %vm210_vm9, %v1935_v44, 5 }
 0x257   :  { %v212_v47 = vsel %vm198_vm8, %v211_v46, 2147483647 }
 0x258   :  { %v214_v48 = vshra.s32 %v212_v47, 16  ;;  %v213_v50 = vand.u32 65535, %v212_v47 }
 0x25a   :  { %v216_v49 = vcvt.s32.f32 %v214_v48  ;;  %v215_v52 = vcvt.s32.f32 %v213_v50 }
 0x25c   :  { %217 = vmin.xlane.f32.xlu2 %v216_v49 }
 0x2cf   :  { %v218_v51 = vpop.xlane.xlu2 %217 }
 0x2d0   :  { %vm219_vm10 = vcmp.eq.f32.partialorder %v216_v49, %v218_v51  ;;  %v224_v54 = vcvt.f32.s32 %v218_v51 }
 0x2d1   :  { %v220_v53 = vsel %vm219_vm10, %v215_v52, inf }
 0x2d2   :  { %221 = vmin.xlane.f32.xlu2 %v220_v53  ;;  %v225_v56 = vshll.u32 %v224_v54, 16  ;;  %v2006_v54 = vld [vmem:[%s2237_s7] sm:$0x1] }
 0x345   :  { %v222_v55 = vpop.xlane.xlu2 %221 }
 0x346   :  { %v223_v57 = vcvt.f32.s32 %v222_v55 }
 0x348   :  { %v226_v58 = vadd.s32 %v225_v56, %v223_v57 }
 0x34a   :  { %v227_v59 = vrot.slane %v226_v58, 4 }
 0x34c   :  { %vm228_vm11 = vcmp.lt.s32.totalorder %v226_v58, %v227_v59 }
 0x34d   :  { %v229_v60 = vsel %vm228_vm11, %v226_v58, %v227_v59 }
 0x34e   :  { %v230_v61 = vrot.slane %v229_v60, 2 }
 0x350   :  { %vm231_vm12 = vcmp.lt.s32.totalorder %v229_v60, %v230_v61 }
 0x351   :  { %v232_v62 = vsel %vm231_vm12, %v229_v60, %v230_v61 }
 0x352   :  { %v233_v63 = vrot.slane %v232_v62, 1 }
 0x354   :  { %vm234_vm13 = vcmp.lt.s32.totalorder %v232_v62, %v233_v63 }
 0x355   :  { %v235_v0 = vsel %vm234_vm13, %v232_v62, %v233_v63 }
 0x356   :  { %1687 = vpush %v235_v0 }
 0x387   :  { %s1688_s19 = spop %1687 }
 0x388   :  { %238 = sst [smem:[#allocation5]] %s1688_s19  ;;  %s239_s21 = scalar_lea.vmem [#allocation2], %s1688_s19 }
 0x389   :  { %v240_v13 = vld [vmem:[%s239_s21] sm:$0x1] }
 0x38a   :  { %1592 = vmatmul.msk.f32.vlgmr.msra.gmra.mxu3 %vm241_vm15, %v240_v13 }
 0x38b   :  { %1601 = vmatpush.msk.msra.mxu3 %vm74_vm0, %v1596_v11 }
 0x392   :  { %289 = vmatmul.f32.vlgmr.msrb.gmra.mxu3 %v1808_v12 }
 0x393   :  { %742 = vmatpush.msrb.mxu3 %v1942_v1 }
 0x395   :  { %743 = vmatpush.msrb.mxu3 %v1949_v8 }
 0x39a   :  { %1602 = vmatmul.msk.f32.vlgmr.msra.gmra.mxu3 %vm64_vm1, %v1885_v3 }
 0x3a2   :  { %1603 = vmatmul.msk.f32.gmra.mxu3 %vm64_vm1, %v1899_v5 }
 0x3aa   :  { %1604 = vmatmul.msk.f32.gmra.mxu3 %vm64_vm1, %v1913_v7 }
 0x40d   :  { %v262_v14 = vpop.f32.mrf.mxu3 }
 0x40e   :  { %v263_v55 = vadd.f32 %v262_v14, %v2006_v54 }
 0x415   :  { %v290_v15 = vpop.f32.mrf.mxu3 }
 0x416   :  { %v291_v46 = vadd.f32 %v290_v15, %v1999_v45 }
 0x418   :  { %v293_v56 = vadd.f32 %v291_v46, %v263_v55 }
 0x41a   :  { %v1594_v57 = vmul.f32 -1.442695, %v293_v56 }
 0x41c   :  { %1718 = vpow2.f32 %v1594_v57 }
 0x41d   :  { %v384_v17 = vpop.f32.mrf.mxu3 }
 0x41e   :  { %vm393_vm2 = vcmp.ne.f32.partialorder %v384_v17, 0.0  ;;  %v402_v18 = vsub.f32 %v355_v16, %v384_v17 }
 0x41f   :  { %v1605_v20 = vsel %vm393_vm2, 1.0, %v1808_v12 }
 0x420   :  { %v405_v19 = vand.u32 2147483647, %v402_v18 }
 0x422   :  { %v408_v22 = vmul.f32 %v1605_v20, %v405_v19  ;;  %v1719_v58 = vpop.eup %1718 }
 0x423   :  { %v297_v59 = vadd.f32 1.0, %v1719_v58 }
 0x424   :  { %v411_v23 = vsel %vm160_vm3, %v408_v22, 0.0 }
 0x425   :  { %412 = vadd.xlane.f32.xlu2 %v411_v23  ;;  %v387_v24 = vpop.f32.mrf.mxu3  ;;  %1720 = vrcp.f32 %v297_v59  ;;  %v309_v16 = vand.u32 2147483648, %v297_v59  ;;  %vm303_vm11 = vweird.f32 %v297_v59  ;;  %v307_v17 = vand.u32 2147483647, %v297_v59 }
 0x426   :  { %vm394_vm4 = vcmp.ne.f32.partialorder %v387_v24, 0.0  ;;  %v403_v25 = vsub.f32 %v358_v21, %v387_v24 }
 0x427   :  { %v1606_v27 = vsel %vm394_vm4, 1.0, %v1808_v12  ;;  %v310_v20 = vor.u32 1.1754944e-38, %v309_v16  ;;  %vm308_vm13 = vcmp.eq.f32.partialorder %v307_v17, 8.507059e+37 }
 0x428   :  { %v406_v26 = vand.u32 2147483647, %v403_v25 }
 0x42a   :  { %v409_v28 = vmul.f32 %v1606_v27, %v406_v26 }
 0x42b   :  { %v1721_v10 = vpop.eup %1720 }
 0x42c   :  { %v414_v30 = vsel %vm160_vm3, %v409_v28, 0.0  ;;  %v299_v11 = vmul.f32 %v1721_v10, %v297_v59  ;;  %vm304_vm10 = vweird.f32 %v1721_v10 }
 0x42d   :  { %415 = vadd.xlane.f32.xlu1 %v414_v30  ;;  %v390_v31 = vpop.f32.mrf.mxu3  ;;  %vm305_vm12 = vmor %vm303_vm11, %vm304_vm10  ;;  %vm265_vm10 = vcmask 39936  }
 0x42e   :  { %vm395_vm6 = vcmp.ne.f32.partialorder %v390_v31, 0.0  ;;  %v404_v33 = vsub.f32 %v361_v29, %v390_v31  ;;  %v300_v13 = vsub.f32 1.0, %v299_v11 }
 0x42f   :  { %v1607_v35 = vsel %vm395_vm6, 1.0, %v1808_v12 }
 0x430   :  { %v407_v34 = vand.u32 2147483647, %v404_v33  ;;  %v301_v14 = vmul.f32 %v1721_v10, %v300_v13 }
 0x432   :  { %v410_v36 = vmul.f32 %v1607_v35, %v407_v34  ;;  %v302_v15 = vadd.f32 %v1721_v10, %v301_v14 }
 0x434   :  { %v417_v37 = vsel %vm167_vm5, %v410_v36, 0.0  ;;  %v306_v18 = vsel %vm305_vm12, %v1721_v10, %v302_v15 }
 0x435   :  { %418 = vadd.xlane.f32.xlu0 %v417_v37  ;;  %v311_v21 = vsel %vm308_vm13, %v310_v20, %v306_v18 }
 0x436   :  { %v324_v37 = vsub.f32 1.0, %v311_v21 }
 0x498   :  { %v413_v40 = vpop.xlane.xlu2 %412 }
 0x4a0   :  { %v416_v39 = vpop.xlane.xlu1 %415 }
 0x4a8   :  { %v419_v38 = vpop.xlane.xlu0 %418 }
 0x4a9   :  { %1608 = vmatpush.msk.msrb.mxu0 %vm74_vm0, %v419_v38 }
 0x4ab   :  { %437 = vmatpush.msrb.mxu0 %v416_v39 }
 0x4ad   :  { %438 = vmatpush.msrb.mxu0 %v413_v40  ;;  %v330_v40 = vmul.f32 0.0, %v311_v21 }
 0x4ae   :  { %1609 = vmatmul.msk.f32.vlgmr.msrb.gmra.mxu0 %vm171_vm7, %v1929_v32 }
 0x4af   :  { %1611 = vmatpush.msk.msra.mxu0 %vm269_vm14, %v1956_v9 }
 0x52b   :  { %v440_v41 = vpop.f32.mrf.mxu0 }
 0x52c   :  { %v443_v42 = vsel %vm198_vm8, %v440_v41, inf }
 0x52d   :  { %444 = vmin.xlane.f32.xlu0 %v443_v42 }
 0x541   :  { %314 = vrot.lane.b32.xlu0 %v291_v46, %s1809_s24 }
 0x5a0   :  { %v445_v47 = vpop.xlane.xlu0 %444 }
 0x5a1   :  { %v446_v48 = vrot.slane %v445_v47, 4 }
 0x5a3   :  { %v447_v49 = vmin.f32 %v445_v47, %v446_v48 }
 0x5a5   :  { %v448_v50 = vrot.slane %v447_v49, 2 }
 0x5a7   :  { %v449_v51 = vmin.f32 %v447_v49, %v448_v50  ;;  %v1615_v50 = vld [vmem:[%s2230_s0 + $0xc] sm:$0xf] }
 0x5a8   :  { %1620 = vmatpush.msk.msra.mxu2 %vm74_vm0, %v1615_v50 }
 0x5a9   :  { %v450_v52 = vrot.slane %v449_v51, 1  ;;  %1621 = vmatmul.msk.f32.vlgmr.msra.gmra.mxu2 %vm64_vm1, %v1885_v3 }
 0x5aa   :  { %982 = vmatpush.msrb.mxu2 %v1942_v1 }
 0x5ab   :  { %v451_v53 = vmin.f32 %v449_v51, %v450_v52  ;;  %v1614_v51 = vld [vmem:[%s2230_s0 + $0x8] sm:$0xf] }
 0x5ac   :  { %1616 = vmatpush.msk.msra.mxu1 %vm74_vm0, %v1614_v51  ;;  %983 = vmatpush.msrb.mxu2 %v1949_v8 }
 0x5ad   :  { %1689 = vpush %v451_v53 }
 0x5b1   :  { %1622 = vmatmul.msk.f32.gmra.mxu2 %vm64_vm1, %v1899_v5 }
 0x5b3   :  { %v315_v19 = vpop.permute.xlu0 %314 }
 0x5b4   :  { %v317_v22 = vmul.f32 %v315_v19, %v311_v21 }
 0x5b9   :  { %1623 = vmatmul.msk.f32.gmra.mxu2 %vm64_vm1, %v1913_v7 }
 0x5de   :  { %s1690_s27 = spop %1689 }
 0x5df   :  { %v453_v60 = vstv %s1690_s27 }
 0x5e0   :  { %vm454_vm9 = vcmp.eq.f32.partialorder %v440_v41, %v453_v60 }
 0x5e1   :  { %v455_v61 = vsel %vm454_vm9, %v1935_v44, 5 }
 0x5e2   :  { %v456_v62 = vsel %vm198_vm8, %v455_v61, 2147483647 }
 0x5e3   :  { %v458_v63 = vshra.s32 %v456_v62, 16  ;;  %v457_v23 = vand.u32 65535, %v456_v62 }
 0x5e5   :  { %v460_v0 = vcvt.s32.f32 %v458_v63  ;;  %v459_v25 = vcvt.s32.f32 %v457_v23 }
 0x5e7   :  { %461 = vmin.xlane.f32.xlu1 %v460_v0 }
 0x600   :  { %319 = vrot.lane.b32.xlu1 %v317_v22, %s1810_s28 }
 0x62c   :  { %v624_v56 = vpop.f32.mrf.mxu2 }
 0x62d   :  { %vm633_vm11 = vcmp.ne.f32.partialorder %v624_v56, 0.0 }
 0x62e   :  { %v1624_v60 = vsel %vm633_vm11, 1.0, %v1808_v12 }
 0x634   :  { %v627_v61 = vpop.f32.mrf.mxu2 }
 0x635   :  { %vm634_vm12 = vcmp.ne.f32.partialorder %v627_v61, 0.0 }
 0x636   :  { %v1625_v13 = vsel %vm634_vm12, 1.0, %v1808_v12 }
 0x63c   :  { %v630_v15 = vpop.f32.mrf.mxu2 }
 0x63d   :  { %vm635_vm13 = vcmp.ne.f32.partialorder %v630_v15, 0.0 }
 0x63e   :  { %v1626_v20 = vsel %vm635_vm13, 1.0, %v1808_v12 }
 0x65a   :  { %v462_v24 = vpop.xlane.xlu1 %461 }
 0x65b   :  { %vm463_vm2 = vcmp.eq.f32.partialorder %v460_v0, %v462_v24  ;;  %v468_v30 = vcvt.f32.s32 %v462_v24 }
 0x65c   :  { %v464_v26 = vsel %vm463_vm2, %v459_v25, inf }
 0x65d   :  { %465 = vmin.xlane.f32.xlu2 %v464_v26  ;;  %v469_v33 = vshll.u32 %v468_v30, 16 }
 0x672   :  { %v320_v27 = vpop.permute.xlu1 %319 }
 0x673   :  { %v322_v28 = vadd.f32 %v320_v27, %v263_v55 }
 0x675   :  { %1722 = vtanh.f32 %v322_v28 }
 0x67b   :  { %v1723_v29 = vpop.eup %1722 }
 0x67c   :  { %326 = vrot.lane.b32.xlu2 %v1723_v29, %s1811_s29 }
 0x6d0   :  { %v466_v31 = vpop.xlane.xlu2 %465 }
 0x6d1   :  { %v467_v34 = vcvt.f32.s32 %v466_v31 }
 0x6d3   :  { %v470_v35 = vadd.s32 %v469_v33, %v467_v34 }
 0x6d5   :  { %v471_v36 = vrot.slane %v470_v35, 4 }
 0x6d7   :  { %vm472_vm4 = vcmp.lt.s32.totalorder %v470_v35, %v471_v36 }
 0x6d8   :  { %v327_v38 = vpop.permute.xlu2 %326  ;;  %v473_v39 = vsel %vm472_vm4, %v470_v35, %v471_v36 }
 0x6d9   :  { %v329_v41 = vmul.f32 %v327_v38, %v324_v37  ;;  %v474_v42 = vrot.slane %v473_v39, 2 }
 0x6db   :  { %v2013_v46 = vadd.f32 %v330_v40, %v329_v41  ;;  %vm475_vm6 = vcmp.lt.s32.totalorder %v473_v39, %v474_v42 }
 0x6dc   :  { %v476_v47 = vsel %vm475_vm6, %v473_v39, %v474_v42 }
 0x6dd   :  { %509 = vrot.lane.b32.xlu0 %v2013_v46, %s1811_s29  ;;  %v477_v48 = vrot.slane %v476_v47, 1 }
 0x6df   :  { %vm478_vm9 = vcmp.lt.s32.totalorder %v476_v47, %v477_v48 }
 0x6e0   :  { %v479_v49 = vsel %vm478_vm9, %v476_v47, %v477_v48 }
 0x6e1   :  { %1691 = vpush %v479_v49 }
 0x712   :  { %s1692_s13 = spop %1691 }
 0x713   :  { %482 = sst [smem:[#allocation5 + $0x1]] %s1692_s13  ;;  %s483_s14 = scalar_lea.vmem [#allocation2], %s1692_s13 }
 0x714   :  { %v484_v52 = vld [vmem:[%s483_s14] sm:$0x1] }
 0x715   :  { %1610 = vmatmul.msk.f32.vlgmr.msrb.gmra.mxu1 %vm241_vm15, %v484_v52 }
 0x71d   :  { %1617 = vmatmul.msk.f32.vlgmr.msra.gmra.mxu1 %vm64_vm1, %v1878_v2 }
 0x725   :  { %1618 = vmatmul.msk.f32.gmra.mxu1 %vm64_vm1, %v1894_v4 }
 0x72d   :  { %1619 = vmatmul.msk.f32.gmra.mxu1 %vm64_vm1, %v1908_v6 }
 0x74f   :  { %v510_v53 = vpop.permute.xlu0 %509 }
 0x750   :  { %1612 = vmatmul.msk.f32.vlgmr.msra.gmra.mxu0 %vm265_vm10, %v510_v53 }
 0x792   :  { %v505_v55 = vpop.f32.mrf.mxu1 }
 0x793   :  { %v506_v28 = vadd.f32 %v505_v55, %v2006_v54 }
 0x79a   :  { %v595_v57 = vpop.f32.mrf.mxu1 }
 0x79b   :  { %v642_v58 = vsub.f32 %v595_v57, %v624_v56 }
 0x79d   :  { %v645_v59 = vand.u32 2147483647, %v642_v58 }
 0x79f   :  { %v648_v62 = vmul.f32 %v1624_v60, %v645_v59 }
 0x7a1   :  { %v651_v63 = vsel %vm160_vm3, %v648_v62, 0.0 }
 0x7a2   :  { %v598_v0 = vpop.f32.mrf.mxu1  ;;  %652 = vadd.xlane.f32.xlu0 %v651_v63 }
 0x7a3   :  { %v643_v10 = vsub.f32 %v598_v0, %v627_v61 }
 0x7a5   :  { %v646_v11 = vand.u32 2147483647, %v643_v10 }
 0x7a7   :  { %v649_v14 = vmul.f32 %v1625_v13, %v646_v11 }
 0x7a9   :  { %v654_v16 = vsel %vm160_vm3, %v649_v14, 0.0 }
 0x7aa   :  { %v601_v17 = vpop.f32.mrf.mxu1  ;;  %655 = vadd.xlane.f32.xlu1 %v654_v16 }
 0x7ab   :  { %v644_v18 = vsub.f32 %v601_v17, %v630_v15 }
 0x7ad   :  { %v647_v19 = vand.u32 2147483647, %v644_v18 }
 0x7af   :  { %v650_v21 = vmul.f32 %v1626_v20, %v647_v19 }
 0x7b1   :  { %v657_v22 = vsel %vm167_vm5, %v650_v21, 0.0 }
 0x7b2   :  { %658 = vadd.xlane.f32.xlu2 %v657_v22 }
 0x7cd   :  { %v530_v23 = vpop.f32.mrf.mxu0 }
 0x7ce   :  { %v531_v24 = vadd.f32 %v530_v23, %v1999_v45 }
 0x7d0   :  { %554 = vrot.lane.b32.xlu1 %v531_v24, %s1809_s24  ;;  %v533_v29 = vadd.f32 %v531_v24, %v506_v28 }
 0x7d2   :  { %v1613_v30 = vmul.f32 -1.442695, %v533_v29 }
 0x7d4   :  { %1724 = vpow2.f32 %v1613_v30 }
 0x7da   :  { %v1725_v31 = vpop.eup %1724 }
 0x7db   :  { %v537_v33 = vadd.f32 1.0, %v1725_v31 }
 0x7dd   :  { %1726 = vrcp.f32 %v537_v33  ;;  %v549_v41 = vand.u32 2147483648, %v537_v33  ;;  %vm543_vm4 = vweird.f32 %v537_v33  ;;  %v547_v42 = vand.u32 2147483647, %v537_v33 }
 0x7df   :  { %v550_v48 = vor.u32 1.1754944e-38, %v549_v41  ;;  %vm548_vm9 = vcmp.eq.f32.partialorder %v547_v42, 8.507059e+37 }
 0x7e3   :  { %v1727_v35 = vpop.eup %1726 }
 0x7e4   :  { %v539_v37 = vmul.f32 %v1727_v35, %v537_v33  ;;  %vm544_vm2 = vweird.f32 %v1727_v35 }
 0x7e5   :  { %vm545_vm6 = vmor %vm543_vm4, %vm544_vm2 }
 0x7e6   :  { %v540_v38 = vsub.f32 1.0, %v539_v37 }
 0x7e8   :  { %v541_v39 = vmul.f32 %v1727_v35, %v540_v38 }
 0x7ea   :  { %v542_v40 = vadd.f32 %v1727_v35, %v541_v39 }
 0x7ec   :  { %v546_v47 = vsel %vm545_vm6, %v1727_v35, %v542_v40 }
 0x7ed   :  { %v551_v50 = vsel %vm548_vm9, %v550_v48, %v546_v47 }
 0x7ee   :  { %v570_v31 = vmul.f32 %v551_v50, %v2013_v46  ;;  %v1634_v46 = vld [vmem:[%s2230_s0 + $0x10] sm:$0xf] }
 0x815   :  { %v653_v27 = vpop.xlane.xlu0 %652 }
 0x81d   :  { %v656_v26 = vpop.xlane.xlu1 %655 }
 0x825   :  { %v659_v25 = vpop.xlane.xlu2 %658 }
 0x826   :  { %1627 = vmatpush.msk.msrb.mxu0 %vm74_vm0, %v659_v25 }
 0x828   :  { %677 = vmatpush.msrb.mxu0 %v656_v26 }
 0x82a   :  { %678 = vmatpush.msrb.mxu0 %v653_v27 }
 0x82b   :  { %1628 = vmatmul.msk.f32.vlgmr.msrb.gmra.mxu0 %vm171_vm7, %v1929_v32 }
 0x82c   :  { %1630 = vmatpush.msk.msra.mxu0 %vm269_vm14, %v1956_v9 }
 0x82e   :  { %1639 = vmatpush.msk.msrb.mxu0 %vm74_vm0, %v1634_v46 }
 0x842   :  { %v555_v49 = vpop.permute.xlu1 %554 }
 0x843   :  { %v557_v51 = vmul.f32 %v555_v49, %v551_v50 }
 0x8a8   :  { %v680_v34 = vpop.f32.mrf.mxu0 }
 0x8a9   :  { %v683_v36 = vsel %vm198_vm8, %v680_v34, inf }
 0x8aa   :  { %684 = vmin.xlane.f32.xlu2 %v683_v36  ;;  %v1633_v36 = vld [vmem:[%s2230_s0 + $0xc] sm:$0xf] }
 0x8ab   :  { %1635 = vmatpush.msk.msra.mxu3 %vm74_vm0, %v1633_v36 }
 0x8c2   :  { %559 = vrot.lane.b32.xlu2 %v557_v51, %s1810_s28 }
 0x91d   :  { %v685_v52 = vpop.xlane.xlu2 %684 }
 0x91e   :  { %v686_v53 = vrot.slane %v685_v52, 4 }
 0x920   :  { %v687_v55 = vmin.f32 %v685_v52, %v686_v53 }
 0x922   :  { %v688_v56 = vrot.slane %v687_v55, 2 }
 0x924   :  { %v689_v57 = vmin.f32 %v687_v55, %v688_v56 }
 0x925   :  { %v560_v15 = vpop.permute.xlu2 %559 }
 0x926   :  { %v690_v58 = vrot.slane %v689_v57, 1  ;;  %v562_v16 = vadd.f32 %v560_v15, %v506_v28  ;;  %v564_v28 = vsub.f32 1.0, %v551_v50 }
 0x928   :  { %v691_v59 = vmin.f32 %v689_v57, %v690_v58  ;;  %1728 = vtanh.f32 %v562_v16 }
 0x92a   :  { %1693 = vpush %v691_v59 }
 0x92e   :  { %v1729_v17 = vpop.eup %1728 }
 0x95b   :  { %s1694_s15 = spop %1693 }
 0x95c   :  { %v693_v60 = vstv %s1694_s15 }
 0x95d   :  { %vm694_vm11 = vcmp.eq.f32.partialorder %v680_v34, %v693_v60 }
 0x95e   :  { %v695_v61 = vsel %vm694_vm11, %v1935_v44, 5 }
 0x95f   :  { %v696_v62 = vsel %vm198_vm8, %v695_v61, 2147483647 }
 0x960   :  { %v698_v63 = vshra.s32 %v696_v62, 16  ;;  %v697_v10 = vand.u32 65535, %v696_v62 }
 0x962   :  { %v700_v0 = vcvt.s32.f32 %v698_v63  ;;  %v699_v13 = vcvt.s32.f32 %v697_v10 }
 0x964   :  { %701 = vmin.xlane.f32.xlu0 %v700_v0 }
 0x9d7   :  { %v702_v11 = vpop.xlane.xlu0 %701 }
 0x9d8   :  { %vm703_vm12 = vcmp.eq.f32.partialorder %v700_v0, %v702_v11  ;;  %v708_v18 = vcvt.f32.s32 %v702_v11 }
 0x9d9   :  { %v704_v14 = vsel %vm703_vm12, %v699_v13, inf }
 0x9da   :  { %705 = vmin.xlane.f32.xlu0 %v704_v14  ;;  %v709_v20 = vshll.u32 %v708_v18, 16 }
 0x9ee   :  { %566 = vrot.lane.b32.xlu0 %v1729_v17, %s1811_s29 }
 0xa4d   :  { %v706_v19 = vpop.xlane.xlu0 %705 }
 0xa4e   :  { %v707_v21 = vcvt.f32.s32 %v706_v19 }
 0xa50   :  { %v710_v22 = vadd.s32 %v709_v20, %v707_v21 }
 0xa52   :  { %v711_v23 = vrot.slane %v710_v22, 4 }
 0xa54   :  { %vm712_vm13 = vcmp.lt.s32.totalorder %v710_v22, %v711_v23 }
 0xa55   :  { %v713_v24 = vsel %vm712_vm13, %v710_v22, %v711_v23 }
 0xa56   :  { %v714_v25 = vrot.slane %v713_v24, 2 }
 0xa58   :  { %vm715_vm2 = vcmp.lt.s32.totalorder %v713_v24, %v714_v25 }
 0xa59   :  { %v716_v26 = vsel %vm715_vm2, %v713_v24, %v714_v25 }
 0xa5a   :  { %v717_v27 = vrot.slane %v716_v26, 1 }
 0xa5c   :  { %vm718_vm4 = vcmp.lt.s32.totalorder %v716_v26, %v717_v27 }
 0xa5d   :  { %v719_v29 = vsel %vm718_vm4, %v716_v26, %v717_v27 }
 0xa5e   :  { %1695 = vpush %v719_v29 }
 0xa60   :  { %v567_v30 = vpop.permute.xlu0 %566 }
 0xa61   :  { %v569_v33 = vmul.f32 %v567_v30, %v564_v28 }
 0xa63   :  { %v2061_v34 = vadd.f32 %v570_v31, %v569_v33 }
 0xa65   :  { %749 = vrot.lane.b32.xlu1 %v2061_v34, %s1811_s29 }
 0xa8f   :  { %s1696_s16 = spop %1695 }
 0xa90   :  { %722 = sst [smem:[#allocation5 + $0x2]] %s1696_s16  ;;  %s723_s17 = scalar_lea.vmem [#allocation2], %s1696_s16 }
 0xa91   :  { %v724_v35 = vld [vmem:[%s723_s17] sm:$0x1]  ;;  %s1815_s17 = smov [#allocation5]  }
 0xa92   :  { %1629 = vmatmul.msk.f32.vlgmr.msrb.gmra.mxu3 %vm241_vm15, %v724_v35 }
 0xa9a   :  { %1636 = vmatmul.msk.f32.vlgmr.msra.gmra.mxu3 %vm64_vm1, %v1878_v2 }
 0xaa2   :  { %1637 = vmatmul.msk.f32.gmra.mxu3 %vm64_vm1, %v1894_v4 }
 0xaaa   :  { %1638 = vmatmul.msk.f32.gmra.mxu3 %vm64_vm1, %v1908_v6 }
 0xad7   :  { %v750_v37 = vpop.permute.xlu1 %749 }
 0xad8   :  { %1631 = vmatmul.msk.f32.vlgmr.msra.gmra.mxu0 %vm265_vm10, %v750_v37 }
 0xad9   :  { %1222 = vmatpush.msra.mxu0 %v1942_v1 }
 0xadb   :  { %1223 = vmatpush.msra.mxu0 %v1949_v8 }
 0xae0   :  { %1640 = vmatmul.msk.f32.vlgmr.msrb.gmra.mxu0 %vm64_vm1, %v1885_v3 }
 0xae8   :  { %1641 = vmatmul.msk.f32.gmra.mxu0 %vm64_vm1, %v1899_v5 }
 0xaf0   :  { %1642 = vmatmul.msk.f32.gmra.mxu0 %vm64_vm1, %v1913_v7 }
 0xb15   :  { %v745_v2 = vpop.f32.mrf.mxu3 }
 0xb16   :  { %v746_v60 = vadd.f32 %v745_v2, %v2006_v54 }
 0xb1d   :  { %v835_v38 = vpop.f32.mrf.mxu3 }
 0xb25   :  { %v838_v42 = vpop.f32.mrf.mxu3 }
 0xb2d   :  { %v841_v50 = vpop.f32.mrf.mxu3 }
 0xb55   :  { %v770_v4 = vpop.f32.mrf.mxu0 }
 0xb56   :  { %v771_v59 = vadd.f32 %v770_v4, %v1999_v45 }
 0xb58   :  { %v773_v61 = vadd.f32 %v771_v59, %v746_v60 }
 0xb5a   :  { %v1632_v62 = vmul.f32 -1.442695, %v773_v61 }
 0xb5c   :  { %1730 = vpow2.f32 %v1632_v62  ;;  %v1653_v62 = vld [vmem:[%s2230_s0 + $0x14] sm:$0xf] }
 0xb5d   :  { %v864_v39 = vpop.f32.mrf.mxu0 }
 0xb5e   :  { %vm873_vm6 = vcmp.ne.f32.partialorder %v864_v39, 0.0  ;;  %v882_v40 = vsub.f32 %v835_v38, %v864_v39 }
 0xb5f   :  { %v1643_v1 = vsel %vm873_vm6, 1.0, %v1808_v12 }
 0xb60   :  { %v885_v41 = vand.u32 2147483647, %v882_v40 }
 0xb62   :  { %v888_v8 = vmul.f32 %v1643_v1, %v885_v41  ;;  %v1731_v63 = vpop.eup %1730 }
 0xb63   :  { %v777_v0 = vadd.f32 1.0, %v1731_v63  ;;  %v1758_v63 = vld [vmem:[%s2231_s1] sm:$0xff] }
 0xb64   :  { %v891_v47 = vsel %vm160_vm3, %v888_v8, 0.0 }
 0xb65   :  { %892 = vadd.xlane.f32.xlu0 %v891_v47  ;;  %v867_v3 = vpop.f32.mrf.mxu0  ;;  %1732 = vrcp.f32 %v777_v0  ;;  %v789_v19 = vand.u32 2147483648, %v777_v0  ;;  %vm783_vm13 = vweird.f32 %v777_v0  ;;  %v787_v20 = vand.u32 2147483647, %v777_v0 }
 0xb66   :  { %vm874_vm9 = vcmp.ne.f32.partialorder %v867_v3, 0.0  ;;  %v883_v5 = vsub.f32 %v838_v42, %v867_v3 }
 0xb67   :  { %v1644_v7 = vsel %vm874_vm9, 1.0, %v1808_v12  ;;  %v790_v22 = vor.u32 1.1754944e-38, %v789_v19  ;;  %vm788_vm4 = vcmp.eq.f32.partialorder %v787_v20, 8.507059e+37 }
 0xb68   :  { %v886_v48 = vand.u32 2147483647, %v883_v5 }
 0xb6a   :  { %v889_v49 = vmul.f32 %v1644_v7, %v886_v48 }
 0xb6b   :  { %v1733_v10 = vpop.eup %1732 }
 0xb6c   :  { %v894_v51 = vsel %vm160_vm3, %v889_v49, 0.0  ;;  %v779_v11 = vmul.f32 %v1733_v10, %v777_v0  ;;  %vm784_vm12 = vweird.f32 %v1733_v10  ;;  %v1759_v0 = vld [vmem:[%s2231_s1 + $0x8] sm:$0xff] }
 0xb6d   :  { %895 = vadd.xlane.f32.xlu1 %v894_v51  ;;  %v870_v52 = vpop.f32.mrf.mxu0  ;;  %vm785_vm2 = vmor %vm783_vm13, %vm784_vm12 }
 0xb6e   :  { %vm875_vm11 = vcmp.ne.f32.partialorder %v870_v52, 0.0  ;;  %v884_v53 = vsub.f32 %v841_v50, %v870_v52  ;;  %v780_v14 = vsub.f32 1.0, %v779_v11  ;;  %v1760_v11 = vld [vmem:[%s2232_s2] sm:$0xff] }
 0xb6f   :  { %v1645_v56 = vsel %vm875_vm11, 1.0, %v1808_v12 }
 0xb70   :  { %v887_v55 = vand.u32 2147483647, %v884_v53  ;;  %v781_v17 = vmul.f32 %v1733_v10, %v780_v14  ;;  %v1762_v14 = vld [vmem:[%s2232_s2 + $0x10] sm:$0xf] }
 0xb72   :  { %v890_v57 = vmul.f32 %v1645_v56, %v887_v55  ;;  %v782_v18 = vadd.f32 %v1733_v10, %v781_v17 }
 0xb74   :  { %v897_v58 = vsel %vm167_vm5, %v890_v57, 0.0  ;;  %v786_v21 = vsel %vm785_vm2, %v1733_v10, %v782_v18 }
 0xb75   :  { %898 = vadd.xlane.f32.xlu2 %v897_v58  ;;  %v791_v24 = vsel %vm788_vm4, %v790_v22, %v786_v21 }
 0xb76   :  { %v804_v50 = vsub.f32 1.0, %v791_v24  ;;  %v810_v53 = vmul.f32 %v791_v24, %v2061_v34  ;;  %v1652_v34 = vld [vmem:[%s2230_s0 + $0x10] sm:$0xf] }
 0xb77   :  { %1654 = vmatpush.msk.msra.mxu2 %vm74_vm0, %v1652_v34 }
 0xb86   :  { %794 = vrot.lane.b32.xlu1 %v771_v59, %s1809_s24 }
 0xbd8   :  { %v893_v16 = vpop.xlane.xlu0 %892 }
 0xbe0   :  { %v896_v15 = vpop.xlane.xlu1 %895 }
 0xbe8   :  { %v899_v13 = vpop.xlane.xlu2 %898 }
 0xbe9   :  { %1646 = vmatpush.msk.msrb.mxu1 %vm74_vm0, %v899_v13  ;;  %v1761_v13 = vld [vmem:[%s2232_s2 + $0x8] sm:$0xff] }
 0xbeb   :  { %917 = vmatpush.msrb.mxu1 %v896_v15 }
 0xbed   :  { %918 = vmatpush.msrb.mxu1 %v893_v16 }
 0xbee   :  { %1647 = vmatmul.msk.f32.vlgmr.msrb.gmra.mxu1 %vm171_vm7, %v1929_v32 }
 0xbef   :  { %1649 = vmatpush.msk.msra.mxu1 %vm269_vm14, %v1956_v9 }
 0xbf1   :  { %1658 = vmatpush.msk.msrb.mxu1 %vm74_vm0, %v1653_v62 }
 0xbf8   :  { %v795_v23 = vpop.permute.xlu1 %794 }
 0xbf9   :  { %v797_v25 = vmul.f32 %v795_v23, %v791_v24 }
 0xbfb   :  { %799 = vrot.lane.b32.xlu0 %v797_v25, %s1810_s28 }
 0xc6b   :  { %v920_v26 = vpop.f32.mrf.mxu1 }
 0xc6c   :  { %v923_v32 = vsel %vm198_vm8, %v920_v26, inf }
 0xc6d   :  { %924 = vmin.xlane.f32.xlu2 %v923_v32  ;;  %v800_v1 = vpop.permute.xlu0 %799 }
 0xc6e   :  { %v802_v42 = vadd.f32 %v800_v1, %v746_v60 }
 0xc70   :  { %1734 = vtanh.f32 %v802_v42 }
 0xc76   :  { %v1735_v8 = vpop.eup %1734 }
 0xce0   :  { %v925_v27 = vpop.xlane.xlu2 %924 }
 0xce1   :  { %v926_v29 = vrot.slane %v925_v27, 4 }
 0xce3   :  { %v927_v28 = vmin.f32 %v925_v27, %v926_v29 }
 0xce5   :  { %v928_v30 = vrot.slane %v927_v28, 2 }
 0xce7   :  { %v929_v31 = vmin.f32 %v927_v28, %v928_v30 }
 0xce9   :  { %v930_v33 = vrot.slane %v929_v31, 1 }
 0xceb   :  { %v931_v35 = vmin.f32 %v929_v31, %v930_v33 }
 0xced   :  { %1697 = vpush %v931_v35 }
 0xd1e   :  { %s1698_s21 = spop %1697 }
 0xd1f   :  { %v933_v36 = vstv %s1698_s21 }
 0xd20   :  { %vm934_vm6 = vcmp.eq.f32.partialorder %v920_v26, %v933_v36 }
 0xd21   :  { %v935_v46 = vsel %vm934_vm6, %v1935_v44, 5 }
 0xd22   :  { %v936_v37 = vsel %vm198_vm8, %v935_v46, 2147483647 }
 0xd23   :  { %v938_v2 = vshra.s32 %v936_v37, 16  ;;  %v937_v38 = vand.u32 65535, %v936_v37 }
 0xd25   :  { %v940_v4 = vcvt.s32.f32 %v938_v2  ;;  %v939_v40 = vcvt.s32.f32 %v937_v38 }
 0xd27   :  { %941 = vmin.xlane.f32.xlu2 %v940_v4 }
 0xd9a   :  { %v942_v39 = vpop.xlane.xlu2 %941 }
 0xd9b   :  { %vm943_vm9 = vcmp.eq.f32.partialorder %v940_v4, %v942_v39  ;;  %v948_v47 = vcvt.f32.s32 %v942_v39  ;;  %v1763_v39 = vld [vmem:[%s2233_s3] sm:$0x1f] }
 0xd9c   :  { %v944_v41 = vsel %vm943_vm9, %v939_v40, inf }
 0xd9d   :  { %945 = vmin.xlane.f32.xlu2 %v944_v41  ;;  %v949_v5 = vshll.u32 %v948_v47, 16 }
 0xdb5   :  { %806 = vrot.lane.b32.xlu2 %v1735_v8, %s1811_s29 }
 0xe10   :  { %v946_v3 = vpop.xlane.xlu2 %945 }
 0xe11   :  { %v947_v48 = vcvt.f32.s32 %v946_v3 }
 0xe13   :  { %v950_v7 = vadd.s32 %v949_v5, %v947_v48 }
 0xe15   :  { %v951_v49 = vrot.slane %v950_v7, 4 }
 0xe17   :  { %vm952_vm11 = vcmp.lt.s32.totalorder %v950_v7, %v951_v49 }
 0xe18   :  { %v807_v51 = vpop.permute.xlu2 %806  ;;  %v953_v52 = vsel %vm952_vm11, %v950_v7, %v951_v49 }
 0xe19   :  { %v809_v55 = vmul.f32 %v807_v51, %v804_v50  ;;  %v954_v56 = vrot.slane %v953_v52, 2 }
 0xe1b   :  { %v2109_v57 = vadd.f32 %v810_v53, %v809_v55  ;;  %vm955_vm12 = vcmp.lt.s32.totalorder %v953_v52, %v954_v56 }
 0xe1c   :  { %v956_v58 = vsel %vm955_vm12, %v953_v52, %v954_v56 }
 0xe1d   :  { %989 = vrot.lane.b32.xlu1 %v2109_v57, %s1811_s29  ;;  %v957_v59 = vrot.slane %v956_v58, 1 }
 0xe1f   :  { %vm958_vm13 = vcmp.lt.s32.totalorder %v956_v58, %v957_v59 }
 0xe20   :  { %v959_v60 = vsel %vm958_vm13, %v956_v58, %v957_v59 }
 0xe21   :  { %1699 = vpush %v959_v60 }
 0xe52   :  { %s1700_s22 = spop %1699 }
 0xe53   :  { %962 = sst [smem:[#allocation5 + $0x3]] %s1700_s22  ;;  %s963_s23 = scalar_lea.vmem [#allocation2], %s1700_s22 }
 0xe54   :  { %v964_v61 = vld [vmem:[%s963_s23] sm:$0x1] }
 0xe55   :  { %1648 = vmatmul.msk.f32.vlgmr.msrb.gmra.mxu2 %vm241_vm15, %v964_v61 }
 0xe5d   :  { %1655 = vmatmul.msk.f32.vlgmr.msra.gmra.mxu2 %vm64_vm1, %v1758_v63 }
 0xe65   :  { %1656 = vmatmul.msk.f32.gmra.mxu2 %vm64_vm1, %v1759_v0 }
 0xe6d   :  { %1657 = vmatmul.msk.f32.gmra.mxu2 %vm64_vm1, %v1908_v6 }
 0xe8f   :  { %v990_v10 = vpop.permute.xlu1 %989 }
 0xe90   :  { %1650 = vmatmul.msk.f32.vlgmr.msra.gmra.mxu1 %vm265_vm10, %v990_v10 }
 0xe98   :  { %1659 = vmatmul.msk.f32.vlgmr.msrb.gmra.mxu1 %vm64_vm1, %v1760_v11 }
 0xea0   :  { %1660 = vmatmul.msk.f32.gmra.mxu1 %vm64_vm1, %v1761_v13 }
 0xea8   :  { %1661 = vmatmul.msk.f32.gmra.mxu1 %vm64_vm1, %v1762_v14 }
 0xed8   :  { %v985_v6 = vpop.f32.mrf.mxu2 }
 0xed9   :  { %v986_v48 = vadd.f32 %v985_v6, %v2006_v54 }
 0xee0   :  { %v1075_v16 = vpop.f32.mrf.mxu2 }
 0xee8   :  { %v1078_v21 = vpop.f32.mrf.mxu2 }
 0xef0   :  { %v1081_v29 = vpop.f32.mrf.mxu2 }
 0xf0d   :  { %v1010_v15 = vpop.f32.mrf.mxu1 }
 0xf0e   :  { %v1011_v37 = vadd.f32 %v1010_v15, %v1999_v45 }
 0xf10   :  { %v1013_v7 = vadd.f32 %v1011_v37, %v986_v48 }
 0xf12   :  { %v1651_v49 = vmul.f32 -1.442695, %v1013_v7 }
 0xf14   :  { %1736 = vpow2.f32 %v1651_v49 }
 0xf15   :  { %v1104_v17 = vpop.f32.mrf.mxu1 }
 0xf16   :  { %vm1113_vm2 = vcmp.ne.f32.partialorder %v1104_v17, 0.0  ;;  %v1122_v18 = vsub.f32 %v1075_v16, %v1104_v17 }
 0xf17   :  { %v1662_v20 = vsel %vm1113_vm2, 1.0, %v1808_v12 }
 0xf18   :  { %v1125_v19 = vand.u32 2147483647, %v1122_v18 }
 0xf1a   :  { %v1128_v22 = vmul.f32 %v1662_v20, %v1125_v19  ;;  %v1737_v50 = vpop.eup %1736 }
 0xf1b   :  { %v1017_v51 = vadd.f32 1.0, %v1737_v50 }
 0xf1c   :  { %v1131_v23 = vsel %vm160_vm3, %v1128_v22, 0.0 }
 0xf1d   :  { %1132 = vadd.xlane.f32.xlu2 %v1131_v23  ;;  %v1107_v24 = vpop.f32.mrf.mxu1  ;;  %1738 = vrcp.f32 %v1017_v51  ;;  %v1029_v62 = vand.u32 2147483648, %v1017_v51  ;;  %vm1023_vm11 = vweird.f32 %v1017_v51  ;;  %v1027_v63 = vand.u32 2147483647, %v1017_v51 }
 0xf1e   :  { %vm1114_vm4 = vcmp.ne.f32.partialorder %v1107_v24, 0.0  ;;  %v1123_v25 = vsub.f32 %v1078_v21, %v1107_v24 }
 0xf1f   :  { %v1663_v32 = vsel %vm1114_vm4, 1.0, %v1808_v12  ;;  %v1030_v11 = vor.u32 1.1754944e-38, %v1029_v62  ;;  %vm1028_vm13 = vcmp.eq.f32.partialorder %v1027_v63, 8.507059e+37 }
 0xf20   :  { %v1126_v26 = vand.u32 2147483647, %v1123_v25 }
 0xf22   :  { %v1129_v27 = vmul.f32 %v1663_v32, %v1126_v26 }
 0xf23   :  { %v1739_v53 = vpop.eup %1738 }
 0xf24   :  { %v1134_v28 = vsel %vm160_vm3, %v1129_v27, 0.0  ;;  %v1019_v58 = vmul.f32 %v1739_v53, %v1017_v51  ;;  %vm1024_vm9 = vweird.f32 %v1739_v53 }
 0xf25   :  { %1135 = vadd.xlane.f32.xlu1 %v1134_v28  ;;  %v1110_v30 = vpop.f32.mrf.mxu1  ;;  %vm1025_vm12 = vmor %vm1023_vm11, %vm1024_vm9 }
 0xf26   :  { %vm1115_vm6 = vcmp.ne.f32.partialorder %v1110_v30, 0.0  ;;  %v1124_v31 = vsub.f32 %v1081_v29, %v1110_v30  ;;  %v1020_v60 = vsub.f32 1.0, %v1019_v58 }
 0xf27   :  { %v1664_v35 = vsel %vm1115_vm6, 1.0, %v1808_v12 }
 0xf28   :  { %v1127_v33 = vand.u32 2147483647, %v1124_v31  ;;  %v1021_v61 = vmul.f32 %v1739_v53, %v1020_v60 }
 0xf2a   :  { %v1130_v36 = vmul.f32 %v1664_v35, %v1127_v33  ;;  %v1022_v34 = vadd.f32 %v1739_v53, %v1021_v61 }
 0xf2c   :  { %v1137_v46 = vsel %vm167_vm5, %v1130_v36, 0.0  ;;  %v1026_v0 = vsel %vm1025_vm12, %v1739_v53, %v1022_v34  ;;  %vm1514_vm12 = vcmask 73768  }
 0xf2d   :  { %1138 = vadd.xlane.f32.xlu0 %v1137_v46 }
 0xf3e   :  { %1034 = vrot.lane.b32.xlu1 %v1011_v37, %s1809_s24 }
 0xf90   :  { %v1133_v38 = vpop.xlane.xlu2 %1132 }
 0xf98   :  { %v1136_v4 = vpop.xlane.xlu1 %1135 }
 0xfa0   :  { %v1139_v2 = vpop.xlane.xlu0 %1138 }
 0xfa1   :  { %1665 = vmatpush.msk.msrb.mxu3 %vm74_vm0, %v1139_v2 }
 0xfa3   :  { %1157 = vmatpush.msrb.mxu3 %v1136_v4 }
 0xfa5   :  { %1158 = vmatpush.msrb.mxu3 %v1133_v38 }
 0xfa6   :  { %1666 = vmatmul.msk.f32.vlgmr.msrb.gmra.mxu3 %vm171_vm7, %v1763_v39 }
 0xfa7   :  { %1668 = vmatpush.msk.msra.mxu3 %vm269_vm14, %v1956_v9 }
 0xfb0   :  { %v1035_v10 = vpop.permute.xlu1 %1034 }
0x1029   :  { %v1160_v12 = vpop.f32.mrf.mxu3 }
0x102a   :  { %v1163_v40 = vsel %vm198_vm8, %v1160_v12, inf }
0x102b   :  { %1164 = vmin.xlane.f32.xlu0 %v1163_v40 }
0x109e   :  { %v1165_v41 = vpop.xlane.xlu0 %1164 }
0x109f   :  { %v1166_v1 = vrot.slane %v1165_v41, 4 }
0x10a1   :  { %v1167_v42 = vmin.f32 %v1165_v41, %v1166_v1  ;;  %v1671_v1 = vld [vmem:[%s2230_s0 + $0x14] sm:$0xf] }
0x10a3   :  { %v1168_v8 = vrot.slane %v1167_v42, 2 }
0x10a5   :  { %v1169_v47 = vmin.f32 %v1167_v42, %v1168_v8  ;;  %v1293_v42 = vsel %vm167_vm5, %v1671_v1, 0.0 }
0x10a7   :  { %v1170_v3 = vrot.slane %v1169_v47, 1 }
0x10a9   :  { %v1171_v5 = vmin.f32 %v1169_v47, %v1170_v3 }
0x10ab   :  { %1701 = vpush %v1171_v5 }
0x10dc   :  { %s1702_s3 = spop %1701 }
0x10dd   :  { %v1173_v9 = vstv %s1702_s3 }
0x10de   :  { %vm1174_vm7 = vcmp.eq.f32.partialorder %v1160_v12, %v1173_v9 }
0x10df   :  { %v1175_v52 = vsel %vm1174_vm7, %v1935_v44, 5  ;;  %v1031_v44 = vsel %vm1028_vm13, %v1030_v11, %v1026_v0  ;;  %v1336_v11 = vld [vmem:[%s2235_s5] sm:$0xf] }
0x10e0   :  { %v1176_v55 = vsel %vm198_vm8, %v1175_v52, 2147483647  ;;  %v1037_v13 = vmul.f32 %v1035_v10, %v1031_v44  ;;  %v1044_v26 = vsub.f32 1.0, %v1031_v44  ;;  %v1050_v29 = vmul.f32 %v1031_v44, %v2109_v57  ;;  %v1364_v44 = vld [vmem:[%s2235_s5 + $0x4] sm:$0xf]  ;;  %1674 = vmatpush.msk.msrb.mxu3 %vm74_vm0, %v1336_v11 }
0x10e1   :  { %v1178_v56 = vshra.s32 %v1176_v55, 16  ;;  %v1177_v14 = vand.u32 65535, %v1176_v55  ;;  %v1812_v52 = vmov 6.0   ;;  %1676 = vmatpush.msk.msrb.mxu2 %vm74_vm0, %v1364_v44 }
0x10e3   :  { %v1180_v59 = vcvt.s32.f32 %v1178_v56  ;;  %v1179_v15 = vcvt.s32.f32 %v1177_v14 }
0x10e5   :  { %1181 = vmin.xlane.f32.xlu0 %v1180_v59 }
0x10f9   :  { %1039 = vrot.lane.b32.xlu0 %v1037_v13, %s1810_s28 }
0x1123   :  { %1294 = vadd.xlane.f32.xlu0 %v1293_v42 }
0x1158   :  { %v1182_v6 = vpop.xlane.xlu0 %1181 }
0x1159   :  { %vm1183_vm8 = vcmp.eq.f32.partialorder %v1180_v59, %v1182_v6  ;;  %v1188_v20 = vcvt.f32.s32 %v1182_v6  ;;  %v1813_v6 = vmov 5.0  }
0x115a   :  { %v1184_v16 = vsel %vm1183_vm8, %v1179_v15, inf  ;;  %v1764_v15 = vld [vmem:[%s2236_s6] sm:$0x1f] }
0x115b   :  { %1185 = vmin.xlane.f32.xlu2 %v1184_v16  ;;  %v1189_v22 = vshll.u32 %v1188_v20, 16 }
0x116b   :  { %v1040_v17 = vpop.permute.xlu0 %1039 }
0x116c   :  { %v1042_v18 = vadd.f32 %v1040_v17, %v986_v48 }
0x116e   :  { %1740 = vtanh.f32 %v1042_v18 }
0x1174   :  { %v1741_v19 = vpop.eup %1740 }
0x1175   :  { %1046 = vrot.lane.b32.xlu2 %v1741_v19, %s1811_s29 }
0x1196   :  { %v1295_v60 = vpop.xlane.xlu0 %1294 }
0x11ce   :  { %v1186_v21 = vpop.xlane.xlu2 %1185 }
0x11cf   :  { %v1187_v23 = vcvt.f32.s32 %v1186_v21 }
0x11d1   :  { %v1190_v24 = vadd.s32 %v1189_v22, %v1187_v23 }
0x11d3   :  { %v1191_v25 = vrot.slane %v1190_v24, 4 }
0x11d5   :  { %vm1192_vm2 = vcmp.lt.s32.totalorder %v1190_v24, %v1191_v25 }
0x11d6   :  { %v1047_v32 = vpop.permute.xlu2 %1046  ;;  %v1193_v27 = vsel %vm1192_vm2, %v1190_v24, %v1191_v25 }
0x11d7   :  { %v1049_v28 = vmul.f32 %v1047_v32, %v1044_v26  ;;  %v1194_v30 = vrot.slane %v1193_v27, 2 }
0x11d9   :  { %v2167_v31 = vadd.f32 %v1050_v29, %v1049_v28  ;;  %vm1195_vm4 = vcmp.lt.s32.totalorder %v1193_v27, %v1194_v30  ;;  %v1392_v28 = vld [vmem:[%s2235_s5 + $0x8] sm:$0xf] }
0x11da   :  { %v1196_v33 = vsel %vm1195_vm4, %v1193_v27, %v1194_v30  ;;  %v1420_v30 = vld [vmem:[%s2235_s5 + $0xc] sm:$0xf]  ;;  %s1814_s5 = smov 5  }
0x11db   :  { %1229 = vrot.lane.b32.xlu1 %v2167_v31, %s1811_s29  ;;  %v1197_v35 = vrot.slane %v1196_v33, 1  ;;  %1680 = vmatpush.msk.msra.mxu1 %vm74_vm0, %v1420_v30 }
0x11dd   :  { %vm1198_vm6 = vcmp.lt.s32.totalorder %v1196_v33, %v1197_v35 }
0x11de   :  { %v1199_v36 = vsel %vm1198_vm6, %v1196_v33, %v1197_v35 }
0x11df   :  { %1703 = vpush %v1199_v36  ;;  %v1765_v36 = vld [vmem:[%s2238_s8] sm:$0x1] }
0x1210   :  { %s1704_s4 = spop %1703 }
0x1211   :  { %1202 = sst [smem:[#allocation5 + $0x4]] %s1704_s4  ;;  %s1203_s20 = scalar_lea.vmem [#allocation2], %s1704_s4 }
0x1212   :  { %v1204_v46 = vld [vmem:[%s1203_s20] sm:$0x1] }
0x1213   :  { %1667 = vmatmul.msk.f32.vlgmr.msra.gmra.mxu0 %vm241_vm15, %v1204_v46 }
0x124d   :  { %v1230_v57 = vpop.permute.xlu1 %1229 }
0x124e   :  { %1669 = vmatmul.msk.f32.vlgmr.msra.gmra.mxu3 %vm265_vm10, %v1230_v57  ;;  %v1766_v57 = vld [vmem:[%s2237_s7] sm:$0x1] }
0x124f   :  { %1682 = vmatpush.msk.msra.mxu3 %vm269_vm14, %v1764_v15 }
0x1290   :  { %v1225_v4 = vpop.f32.mrf.mxu0 }
0x1291   :  { %v1226_v38 = vadd.f32 %v1225_v4, %v2006_v54 }
0x12d1   :  { %v1250_v37 = vpop.f32.mrf.mxu3 }
0x12d2   :  { %v1251_v2 = vadd.f32 %v1250_v37, %v1999_v45 }
0x12d4   :  { %1274 = vrot.lane.b32.xlu1 %v1251_v2, %s1809_s24  ;;  %v1253_v39 = vadd.f32 %v1251_v2, %v1226_v38 }
0x12d6   :  { %v1670_v12 = vmul.f32 -1.442695, %v1253_v39 }
0x12d8   :  { %1742 = vpow2.f32 %v1670_v12 }
0x12de   :  { %v1743_v40 = vpop.eup %1742 }
0x12df   :  { %v1257_v41 = vadd.f32 1.0, %v1743_v40 }
0x12e1   :  { %1744 = vrcp.f32 %v1257_v41  ;;  %v1269_v54 = vand.u32 2147483648, %v1257_v41  ;;  %vm1263_vm7 = vweird.f32 %v1257_v41  ;;  %v1267_v48 = vand.u32 2147483647, %v1257_v41 }
0x12e2   :  { %1746 = vrcp.f32 %v1812_v52 }
0x12e3   :  { %v1270_v49 = vor.u32 1.1754944e-38, %v1269_v54  ;;  %vm1268_vm11 = vcmp.eq.f32.partialorder %v1267_v48, 8.507059e+37 }
0x12e7   :  { %v1745_v8 = vpop.eup %1744 }
0x12e8   :  { %v1259_v45 = vmul.f32 %v1745_v8, %v1257_v41  ;;  %vm1264_vm15 = vweird.f32 %v1745_v8  ;;  %v1747_v53 = vpop.eup %1746 }
0x12e9   :  { %vm1265_vm9 = vmor %vm1263_vm7, %vm1264_vm15  ;;  %v1297_v55 = vmul.f32 6.0, %v1747_v53  ;;  %vm1301_vm5 = vweird.f32 %v1747_v53 }
0x12ea   :  { %v1260_v47 = vsub.f32 1.0, %v1259_v45 }
0x12eb   :  { %v1298_v56 = vsub.f32 1.0, %v1297_v55 }
0x12ec   :  { %v1261_v3 = vmul.f32 %v1745_v8, %v1260_v47 }
0x12ed   :  { %v1299_v58 = vmul.f32 %v1747_v53, %v1298_v56 }
0x12ee   :  { %v1262_v5 = vadd.f32 %v1745_v8, %v1261_v3 }
0x12ef   :  { %v1300_v59 = vadd.f32 %v1747_v53, %v1299_v58  ;;  %v1513_v58 = vand.u32 127, %v59_v43 }
0x12f0   :  { %v1266_v7 = vsel %vm1265_vm9, %v1745_v8, %v1262_v5 }
0x12f1   :  { %v1271_v51 = vsel %vm1268_vm11, %v1270_v49, %v1266_v7  ;;  %v1302_v61 = vsel %vm1301_vm5, %v1747_v53, %v1300_v59 }
0x12f2   :  { %v1303_v34 = vmul.f32 %v1302_v61, %v1295_v60  ;;  %v1284_v13 = vsub.f32 1.0, %v1271_v51  ;;  %v1290_v16 = vmul.f32 %v1271_v51, %v2167_v31 }
0x12f4   :  { %v1304_v62 = vsub.f32 %v1671_v1, %v1303_v34 }
0x12f6   :  { %1672 = vmatpush.xpose.msk.msrb.mxu0 %vm160_vm3, %v1304_v62 }
0x12f9   :  { %1673 = vmatmul.msk.f32.vlgmr.msrb.gmra.mxu0 %vm160_vm3, %v1304_v62 }
0x12fa   :  { %1678 = vmatpush.msk.msra.mxu0 %vm74_vm0, %v1392_v28 }
0x1346   :  { %v1275_v50 = vpop.permute.xlu1 %1274 }
0x1347   :  { %v1277_v9 = vmul.f32 %v1275_v50, %v1271_v51 }
0x1349   :  { %1279 = vrot.lane.b32.xlu1 %v1277_v9, %s1810_s28 }
0x1376   :  { %v1325_v25 = vpop.f32.mrf.mxu0 }
0x13bb   :  { %v1280_v63 = vpop.permute.xlu1 %1279 }
0x13bc   :  { %v1282_v0 = vadd.f32 %v1280_v63, %v1226_v38 }
0x13be   :  { %1748 = vtanh.f32 %v1282_v0 }
0x13bf   :  { %1750 = vrcp.f32 %v1813_v6 }
0x13c4   :  { %v1749_v10 = vpop.eup %1748 }
0x13c5   :  { %1286 = vrot.lane.b32.xlu2 %v1749_v10, %s1811_s29  ;;  %v1751_v19 = vpop.eup %1750 }
0x13c6   :  { %v1329_v20 = vmul.f32 5.0, %v1751_v19  ;;  %vm1333_vm3 = vweird.f32 %v1751_v19 }
0x13c8   :  { %v1330_v21 = vsub.f32 1.0, %v1329_v20 }
0x13ca   :  { %v1331_v22 = vmul.f32 %v1751_v19, %v1330_v21 }
0x13cc   :  { %v1332_v23 = vadd.f32 %v1751_v19, %v1331_v22 }
0x13ce   :  { %v1334_v24 = vsel %vm1333_vm3, %v1751_v19, %v1332_v23 }
0x13cf   :  { %v1335_v26 = vmul.f32 %v1334_v24, %v1325_v25 }
0x13d1   :  { %v1365_v32 = vrot.slane %v1335_v26, 1  ;;  %1675 = vmatmul.msk.f32.vlgmr.msrb.gmra.mxu3 %vm64_vm1, %v1335_v26  ;;  %v1393_v27 = vrot.slane %v1335_v26, 2  ;;  %v1421_v29 = vrot.slane %v1335_v26, 3 }
0x13d3   :  { %1677 = vmatmul.msk.f32.vlgmr.msrb.gmra.mxu2 %vm64_vm1, %v1365_v32  ;;  %1679 = vmatmul.msk.f32.vlgmr.msra.gmra.mxu0 %vm64_vm1, %v1393_v27 }
0x13d4   :  { %1681 = vmatmul.msk.f32.vlgmr.msra.gmra.mxu1 %vm64_vm1, %v1421_v29 }
0x141f   :  { %v1287_v14 = vpop.permute.xlu2 %1286 }
0x1420   :  { %v1289_v17 = vmul.f32 %v1287_v14, %v1284_v13 }
0x1422   :  { %v2197_v18 = vadd.f32 %v1290_v16, %v1289_v17 }
0x1424   :  { %1449 = vrot.lane.b32.xlu1 %v2197_v18, %s1811_s29 }
0x1450   :  { %v1416_v38 = vpop.f32.mrf.mxu0 }
0x1451   :  { %v1444_v12 = vpop.f32.mrf.mxu1 }
0x1454   :  { %v1360_v33 = vpop.f32.mrf.mxu3 }
0x1455   :  { %v1363_v37 = vadd.f32 %v1766_v57, %v1360_v33 }
0x1456   :  { %v1388_v2 = vpop.f32.mrf.mxu2 }
0x1457   :  { %v1391_v4 = vadd.f32 %v1388_v2, %v1363_v37 }
0x1459   :  { %v1419_v39 = vadd.f32 %v1416_v38, %v1391_v4 }
0x145b   :  { %v1447_v40 = vadd.f32 %v1444_v12, %v1419_v39 }
0x1496   :  { %v1450_v31 = vpop.permute.xlu1 %1449 }
0x1497   :  { %1683 = vmatmul.msk.f32.vlgmr.msra.gmra.mxu3 %vm265_vm10, %v1450_v31 }
0x151a   :  { %v1470_v35 = vpop.f32.mrf.mxu3 }
0x151b   :  { %v1471_v46 = vadd.f32 %v1765_v36, %v1470_v35 }
0x151d   :  { %1494 = vrot.lane.b32.xlu2 %v1471_v46, %s1809_s24  ;;  %v1473_v41 = vadd.f32 %v1471_v46, %v1447_v40 }
0x151f   :  { %v1684_v1 = vmul.f32 -1.442695, %v1473_v41 }
0x1521   :  { %1752 = vpow2.f32 %v1684_v1 }
0x1527   :  { %v1753_v42 = vpop.eup %1752 }
0x1528   :  { %v1477_v8 = vadd.f32 1.0, %v1753_v42 }
0x152a   :  { %1754 = vrcp.f32 %v1477_v8  ;;  %v1489_v48 = vand.u32 2147483648, %v1477_v8  ;;  %vm1483_vm1 = vweird.f32 %v1477_v8  ;;  %v1487_v7 = vand.u32 2147483647, %v1477_v8 }
0x152c   :  { %v1490_v50 = vor.u32 1.1754944e-38, %v1489_v48  ;;  %vm1488_vm10 = vcmp.eq.f32.partialorder %v1487_v7, 8.507059e+37 }
0x1530   :  { %v1755_v45 = vpop.eup %1754 }
0x1531   :  { %v1479_v47 = vmul.f32 %v1755_v45, %v1477_v8  ;;  %vm1484_vm0 = vweird.f32 %v1755_v45 }
0x1532   :  { %vm1485_vm14 = vmor %vm1483_vm1, %vm1484_vm0 }
0x1533   :  { %v1480_v3 = vsub.f32 1.0, %v1479_v47 }
0x1535   :  { %v1481_v5 = vmul.f32 %v1755_v45, %v1480_v3 }
0x1537   :  { %v1482_v54 = vadd.f32 %v1755_v45, %v1481_v5 }
0x1539   :  { %v1486_v49 = vsel %vm1485_vm14, %v1755_v45, %v1482_v54 }
0x153a   :  { %v1491_v9 = vsel %vm1488_vm10, %v1490_v50, %v1486_v49 }
0x153b   :  { %v1504_v59 = vsub.f32 1.0, %v1491_v9  ;;  %v1510_v34 = vmul.f32 %v1491_v9, %v2197_v18 }
0x1577   :  { %v1495_v51 = vpop.permute.xlu2 %1494 }
0x1578   :  { %v1497_v52 = vmul.f32 %v1495_v51, %v1491_v9 }
0x157a   :  { %1499 = vrot.lane.b32.xlu1 %v1497_v52, %s1810_s28  ;;  %s1562_s28 = sshll.u32 %s2239_s9, 4  ;;  %s1563_s28 = int_to_ptr.hbm [resolvable:$true] %s1562_s28 }
0x15ec   :  { %v1500_v53 = vpop.permute.xlu1 %1499 }
0x15ed   :  { %v1502_v55 = vadd.f32 %v1500_v53, %v1447_v40 }
0x15ef   :  { %1756 = vtanh.f32 %v1502_v55 }
0x15f5   :  { %v1757_v56 = vpop.eup %1756 }
0x15f6   :  { %1506 = vrot.lane.b32.xlu2 %v1757_v56, %s1811_s29 }
0x15fe   :  { %1527 = vrot.lane.b32.xlu2 %v1513_v58, %s1814_s5 }
0x1650   :  { %v1507_v60 = vpop.permute.xlu2 %1506 }
0x1651   :  { %v1509_v61 = vmul.f32 %v1507_v60, %v1504_v59 }
0x1653   :  { %v1511_v62 = vadd.f32 %v1510_v34, %v1509_v61 }
0x1655   :  { %v1515_v63 = vsel %vm1514_vm12, %v1511_v62, -inf }
0x1656   :  { %1516 = vmax.xlane.f32.xlu1 %v1515_v63 }
0x1658   :  { %v1528_v43 = vpop.permute.xlu2 %1527 }
0x16c9   :  { %v1517_v0 = vpop.xlane.xlu1 %1516 }
0x16ca   :  { %v1518_v10 = vrot.slane %v1517_v0, 4 }
0x16cc   :  { %v1519_v11 = vmax.f32 %v1517_v0, %v1518_v10 }
0x16ce   :  { %v1520_v44 = vrot.slane %v1519_v11, 2 }
0x16d0   :  { %v1521_v13 = vmax.f32 %v1519_v11, %v1520_v44 }
0x16d2   :  { %v1522_v14 = vrot.slane %v1521_v13, 1 }
0x16d4   :  { %v1523_v6 = vmax.f32 %v1521_v13, %v1522_v14 }
0x16d6   :  { %1705 = vpush %v1523_v6 }
0x1707   :  { %s1706_s7 = spop %1705 }
0x1708   :  { %v1525_v15 = vstv %s1706_s7 }
0x1709   :  { %vm1526_vm13 = vcmp.eq.f32.partialorder %v1511_v62, %v1525_v15 }
0x170a   :  { %v1529_v16 = vsel %vm1526_vm13, %v1528_v43, 5 }
0x170b   :  { %v1530_v17 = vsel %vm1514_vm12, %v1529_v16, 2147483647 }
0x170c   :  { %v1532_v18 = vshra.s32 %v1530_v17, 16  ;;  %v1531_v20 = vand.u32 65535, %v1530_v17 }
0x170e   :  { %v1534_v19 = vcvt.s32.f32 %v1532_v18  ;;  %v1533_v22 = vcvt.s32.f32 %v1531_v20 }
0x1710   :  { %1535 = vmin.xlane.f32.xlu0 %v1534_v19 }
0x1783   :  { %v1536_v21 = vpop.xlane.xlu0 %1535 }
0x1784   :  { %vm1537_vm8 = vcmp.eq.f32.partialorder %v1534_v19, %v1536_v21  ;;  %v1542_v24 = vcvt.f32.s32 %v1536_v21 }
0x1785   :  { %v1538_v23 = vsel %vm1537_vm8, %v1533_v22, inf }
0x1786   :  { %1539 = vmin.xlane.f32.xlu2 %v1538_v23  ;;  %v1543_v26 = vshll.u32 %v1542_v24, 16 }
0x17f9   :  { %v1540_v25 = vpop.xlane.xlu2 %1539 }
0x17fa   :  { %v1541_v32 = vcvt.f32.s32 %v1540_v25 }
0x17fc   :  { %v1544_v27 = vadd.s32 %v1543_v26, %v1541_v32 }
0x17fe   :  { %v1545_v29 = vrot.slane %v1544_v27, 4 }
0x1800   :  { %vm1546_vm2 = vcmp.lt.s32.totalorder %v1544_v27, %v1545_v29 }
0x1801   :  { %v1547_v28 = vsel %vm1546_vm2, %v1544_v27, %v1545_v29 }
0x1802   :  { %v1548_v30 = vrot.slane %v1547_v28, 2 }
0x1804   :  { %vm1549_vm4 = vcmp.lt.s32.totalorder %v1547_v28, %v1548_v30 }
0x1805   :  { %v1550_v31 = vsel %vm1549_vm4, %v1547_v28, %v1548_v30 }
0x1806   :  { %v1551_v33 = vrot.slane %v1550_v31, 1 }
0x1808   :  { %vm1552_vm6 = vcmp.lt.s32.totalorder %v1550_v31, %v1551_v33 }
0x1809   :  { %v1553_v35 = vsel %vm1552_vm6, %v1550_v31, %v1551_v33 }
0x180a   :  { %1707 = vpush %v1553_v35 }
0x183b   :  { %s1708_s29 = spop %1707 }
0x183c   :  { %1556 = sst [smem:[#allocation5 + $0x5]] %s1708_s29 }
0x183d   :  { %1565 = dma.smem_to_hbm %s1815_s17, 16, %s1563_s28, [#allocation4]  }
0x183e   :  { %1805 = dma.done.wait [#allocation4], 16  }
0x183f   :  { %1806 = vsyncadd [#allocation4], 4294967280 }
0x1840   :  { %1570 = sfence }
0x1841   :  { %1571 = vsyncpa [#allocation3], 1 }
0x1842   :  { %1572 = vsyncpa [#allocation4], 1 }

</bundles_post_ra>
